<compile_context>
chip_gen: v7x
topology: tpu7x:2x2x1
jax: 0.10.0
libtpu: 0.0.40
codegen_flags: <defaults>
</compile_context>

<pallas_src>
import functools

import jax
import jax.numpy as jnp
from jax import lax
from jax.experimental import pallas as pl
from jax.experimental.pallas import tpu as pltpu


def _swe_kernel(adj_ref, diag_col_ref, diag_row_ref, w1_ref, b1_ref, w2_ref,
                b2_ref, out_ref, *, block_rows, exact_bf16):
    """Computes one (block_rows, 128) row block of sw_h."""
    tm = block_rows
    row0 = pl.multiple_of(pl.program_id(0) * tm, tm)

    adj = adj_ref[...]                          # (N, N) bf16, resident RHS
    adj_blk = adj_ref[pl.ds(row0, tm), :]       # (tm, N) bf16 rows of this block

    # --- part1 = (A @ A @ A) * A   restricted to this row block -------------
    # bf16 MXU inputs, f32 accumulation.  A is 0/1 so bf16 inputs are exact;
    # A@A entries are integers <= N, so the bf16 recast of the second LHS is
    # only taken when N <= 256 (exactly representable).
    a2 = jnp.dot(adj_blk, adj, preferred_element_type=jnp.float32)          # (tm, N)
    lhs3 = a2.astype(jnp.bfloat16) if exact_bf16 else a2
    a3 = jnp.dot(lhs3, adj, preferred_element_type=jnp.float32)             # (tm, N)
    part1 = a3 * adj_blk.astype(jnp.float32)                                # (tm, N)

    # --- Gamma = nan_to_num(part1 / outer(diag, diag)) -----------------------
    # diag(A@A) is precomputed in the wrapper (grid-invariant).  Applied as two
    # broadcasted reciprocal multiplies; no (N, N) part2 temporary.  For
    # non-negative integer diagonals the inf/nan pattern is identical to the
    # outer-product divide (and avoids f32 overflow of diag[i]*diag[j]).
    gamma = part1 * (1.0 / diag_col_ref[...]) * (1.0 / diag_row_ref[...])
    gamma = jnp.nan_to_num(gamma)

    # --- F.normalize(Gamma, p=2, dim=1)  (eps = 1e-12) ------------------------
    # x * rsqrt(max(sum_sq, eps^2)) == x / max(sqrt(sum_sq), eps); rsqrt -> EUP.
    sum_sq = jnp.sum(gamma * gamma, axis=1, keepdims=True)
    gamma = gamma * lax.rsqrt(jnp.maximum(sum_sq, 1e-24))

    # --- SW = Linear(N, H) -> Tanh -> Linear(H, 128)  (f32) -------------------
    hidden = jnp.tanh(
        jnp.dot(gamma, w1_ref[...], preferred_element_type=jnp.float32) + b1_ref[...]
    )
    out_ref[...] = (
        jnp.dot(hidden, w2_ref[...], preferred_element_type=jnp.float32) + b2_ref[...]
    )


def _vmem_capacity_bytes():
    try:
        return int(pltpu.get_tpu_info().vmem_capacity_bytes)
    except Exception:
        return 64 << 20   # conservative (v7x per-core VMEM)


def _pick_block_rows(n, vmem_bytes):
    """Largest power-of-two row block that (a) divides N, (b) fits VMEM with
    headroom, and (c) leaves grid >= 2 so v7x's two TensorCores both work."""
    if n <= 8:
        return n
    # Resident bf16 adjacency (assume worst-case double buffer) + ~8 live
    # (tm, N) f32 intermediates per step.
    budget = int(vmem_bytes * 0.6) - 4 * n * n
    tm_cap = max(budget // (8 * n * 4), 8)
    best = None
    cand = 8
    while cand <= n // 2:
        if n % cand == 0 and cand <= tm_cap:
            best = cand
        cand *= 2
    if best is None:
        best = n   # nothing smaller divides N; fall back to a single block
    return best


def _build_call(n, h, out_dim, block_rows, vmem_limit, cost, single_buffer, exact_bf16):
    grid = (n // block_rows,)

    def resident(shape):
        if single_buffer:
            return pl.BlockSpec(shape, lambda i: (0, 0), pipeline_mode=pl.Buffered(1))
        return pl.BlockSpec(shape, lambda i: (0, 0))

    return pl.pallas_call(
        functools.partial(_swe_kernel, block_rows=block_rows, exact_bf16=exact_bf16),
        out_shape=jax.ShapeDtypeStruct((n, out_dim), jnp.float32),
        grid_spec=pltpu.PrefetchScalarGridSpec(
            num_scalar_prefetch=0,
            grid=grid,
            in_specs=[
                resident((n, n)),                                   # adj (bf16), resident
                pl.BlockSpec((block_rows, 1), lambda i: (i, 0)),    # diag column, per row block
                resident((1, n)),                                   # diag row, resident
                resident((n, h)),                                   # w1, resident
                resident((1, h)),                                   # b1, resident
                resident((h, out_dim)),                             # w2, resident
                resident((1, out_dim)),                             # b2, resident
            ],
            out_specs=pl.BlockSpec((block_rows, out_dim), lambda i: (i, 0)),
        ),
        compiler_params=pltpu.CompilerParams(
            dimension_semantics=("parallel",),
            vmem_limit_bytes=vmem_limit,
        ),
        cost_estimate=cost,
    )


def structure_weighted_embedding(adj, feats, w1, b1, w2, b2, *, block_rows=None):
    """h = cat([feats, SW(normalize(nan_to_num(part1 / part2)))], dim=1)."""
    n = adj.shape[0]
    h = w1.shape[1]
    out_dim = w2.shape[1]

    vmem_bytes = _vmem_capacity_bytes()
    if block_rows is None:
        block_rows = _pick_block_rows(n, vmem_bytes)
    assert n % block_rows == 0, (n, block_rows)
    vmem_limit = min(int(vmem_bytes * 0.85), 100 << 20)

    # bf16 adjacency: halves resident VMEM / DMA bytes and feeds the MXU at
    # native rate; 0/1 entries are exact in bf16.
    adj_bf = adj.astype(jnp.bfloat16)

    # Grid-invariant diag(A@A): diag[j] = sum_k A[j,k] * A[k,j]; tiny XLA pre-op.
    diag = jnp.sum(adj.astype(jnp.float32) * adj.astype(jnp.float32).T, axis=0)
    diag_col = diag.reshape(n, 1)
    diag_row = diag.reshape(1, n)

    cost = pl.CostEstimate(
        flops=4 * n * n * n + 2 * n * n * h + 2 * n * h * out_dim + 8 * n * n,
        transcendentals=n * h + 3 * n,
        bytes_accessed=2 * n * n + 8 * n + 4 * (n * h + h + h * out_dim + out_dim)
        + 4 * n * out_dim,
    )

    args = (adj_bf, diag_col, diag_row, w1, b1, w2, b2)
    exact_bf16 = n <= 256
    try:
        sw_h = _build_call(n, h, out_dim, block_rows, vmem_limit, cost,
                           single_buffer=True, exact_bf16=exact_bf16)(*args)
    except Exception:
        # Fallback if this jax build rejects pipeline_mode hints.
        sw_h = _build_call(n, h, out_dim, block_rows, vmem_limit, cost,
                           single_buffer=False, exact_bf16=exact_bf16)(*args)

    # Lane-dense (N, 128) kernel output; the concatenation with the passthrough
    # features is plain layout work, done in XLA.
    return jnp.concatenate([feats, sw_h], axis=1)


def reference(adj, feats, w1, b1, w2, b2):
    """Pure-JAX reference mirroring the PyTorch forward."""
    a2 = adj @ adj
    part1 = a2 @ adj * adj
    d = jnp.diag(a2)
    part2 = d.reshape(-1, 1) @ d.reshape(1, -1)
    gamma = jnp.nan_to_num(part1 / part2)
    norm = jnp.linalg.norm(gamma, axis=1, keepdims=True)
    gamma = gamma / jnp.maximum(norm, 1e-12)
    sw_h = jnp.tanh(gamma @ w1 + b1) @ w2 + b2
    return jnp.concatenate([feats, sw_h], axis=1)


if __name__ == "__main__":
    # N nodes in the homogeneous subgraph, feat dim F, MLP hidden H.
    # feat_in of the first Linear == N (Gamma is N x N).
    N, F, H = 128, 32, 64

    key = jax.random.PRNGKey(0)
    k_adj, k_feat, k_w1, k_b1, k_w2, k_b2 = jax.random.split(key, 6)

    # synthetic 0/1 adjacency (dense) of the edge-type subgraph
    adj = jax.random.bernoulli(k_adj, p=0.1, shape=(N, N)).astype(jnp.float32)
    # concatenated node features: cat([feats[src_type], feats[dst_type]], dim=0)
    feats = jax.random.normal(k_feat, (N, F), dtype=jnp.float32)

    # SW = Linear(N, H) -> Tanh -> Linear(H, 128); deterministic init
    w1 = jax.random.normal(k_w1, (N, H), dtype=jnp.float32) * (1.0 / jnp.sqrt(N))
    b1 = jax.random.normal(k_b1, (1, H), dtype=jnp.float32) * 0.01
    w2 = jax.random.normal(k_w2, (H, 128), dtype=jnp.float32) * (1.0 / jnp.sqrt(H))
    b2 = jax.random.normal(k_b2, (1, 128), dtype=jnp.float32) * 0.01

    # Auto block_rows picks 64 -> grid=(2,), so the pipeline / both v7x cores
    # are actually exercised.
    out = structure_weighted_embedding(adj, feats, w1, b1, w2, b2)
    out = jax.block_until_ready(out)

    ref = reference(adj, feats, w1, b1, w2, b2)
    assert out.shape == (N, F + 128), out.shape
    assert jnp.allclose(out, ref, atol=1e-4, rtol=1e-4), float(
        jnp.max(jnp.abs(out - ref))
    )

    # TODO(synk): DGL graph construction (edge_type_subgraph / to_homogeneous /
    # adjacency_matrix) has no Pallas equivalent; the kernel consumes the dense
    # adjacency directly.
    print("KERNEL_OK")
</pallas_src>

<mosaic_0001>
module attributes {stable_mosaic.version = 11 : i64} {
  func.func @_swe_kernel(%arg0: i32, %arg1: memref<128x128xbf16, #tpu.memory_space<vmem>>, %arg2: memref<64x1xf32, #tpu.memory_space<vmem>>, %arg3: memref<1x128xf32, #tpu.memory_space<vmem>>, %arg4: memref<128x64xf32, #tpu.memory_space<vmem>>, %arg5: memref<1x64xf32, #tpu.memory_space<vmem>>, %arg6: memref<64x128xf32, #tpu.memory_space<vmem>>, %arg7: memref<1x128xf32, #tpu.memory_space<vmem>>, %arg8: memref<64x128xf32, #tpu.memory_space<vmem>>) attributes {dimension_semantics = [#tpu.dimension_semantics<parallel>], iteration_bounds = array<i64: 2>, scalar_prefetch = 0 : i64, scratch_operands = 0 : i64, tpu.core_type = #tpu.core_type<tc>, window_params = [{pipeline_mode = #tpu.pipeline_mode<synchronous>, transform_indices = @transform_0, window_bounds = array<i64: 128, 128>}, {transform_indices = @transform_1, window_bounds = array<i64: 64, 1>}, {pipeline_mode = #tpu.pipeline_mode<synchronous>, transform_indices = @transform_2, window_bounds = array<i64: 1, 128>}, {pipeline_mode = #tpu.pipeline_mode<synchronous>, transform_indices = @transform_3, window_bounds = array<i64: 128, 64>}, {pipeline_mode = #tpu.pipeline_mode<synchronous>, transform_indices = @transform_4, window_bounds = array<i64: 1, 64>}, {pipeline_mode = #tpu.pipeline_mode<synchronous>, transform_indices = @transform_5, window_bounds = array<i64: 64, 128>}, {pipeline_mode = #tpu.pipeline_mode<synchronous>, transform_indices = @transform_6, window_bounds = array<i64: 1, 128>}, {transform_indices = @transform_7, window_bounds = array<i64: 64, 128>}]} {
    %c64_i32 = arith.constant 64 : i32
    %0 = arith.muli %arg0, %c64_i32 : i32
    %1 = tpu.assume_multiple %0, 64 : i32
    %c0 = arith.constant 0 : index
    %c0_0 = arith.constant 0 : index
    %2 = vector.load %arg1[%c0, %c0_0] : memref<128x128xbf16, #tpu.memory_space<vmem>>, vector<128x128xbf16>
    %3 = arith.index_cast %1 : i32 to index
    %c0_1 = arith.constant 0 : index
    %4 = vector.load %arg1[%3, %c0_1] : memref<128x128xbf16, #tpu.memory_space<vmem>>, vector<64x128xbf16>
    %cst = arith.constant dense<0.000000e+00> : vector<64x128xf32>
    %5 = tpu.matmul %4, %2, %cst {dimension_numbers = #tpu.dot_dimension_numbers<[1], [0], [0], [1], [0, 0, 1, 1], [], []>} : vector<64x128xbf16>, vector<128x128xbf16>, vector<64x128xf32> -> vector<64x128xf32>
    %6 = arith.truncf %5 : vector<64x128xf32> to vector<64x128xbf16>
    %cst_2 = arith.constant dense<0.000000e+00> : vector<64x128xf32>
    %7 = tpu.matmul %6, %2, %cst_2 {dimension_numbers = #tpu.dot_dimension_numbers<[1], [0], [0], [1], [0, 0, 1, 1], [], []>} : vector<64x128xbf16>, vector<128x128xbf16>, vector<64x128xf32> -> vector<64x128xf32>
    %8 = arith.extf %4 : vector<64x128xbf16> to vector<64x128xf32>
    %9 = arith.mulf %7, %8 : vector<64x128xf32>
    %c0_3 = arith.constant 0 : index
    %c0_4 = arith.constant 0 : index
    %10 = vector.load %arg2[%c0_3, %c0_4] : memref<64x1xf32, #tpu.memory_space<vmem>>, vector<64x1xf32>
    %cst_5 = arith.constant 1.000000e+00 : f32
    %11 = vector.broadcast %cst_5 : f32 to vector<64x1xf32>
    %12 = arith.divf %11, %10 : vector<64x1xf32>
    %13 = vector.broadcast %12 : vector<64x1xf32> to vector<64x128xf32>
    %14 = arith.mulf %9, %13 : vector<64x128xf32>
    %c0_6 = arith.constant 0 : index
    %c0_7 = arith.constant 0 : index
    %15 = vector.load %arg3[%c0_6, %c0_7] : memref<1x128xf32, #tpu.memory_space<vmem>>, vector<1x128xf32>
    %cst_8 = arith.constant 1.000000e+00 : f32
    %16 = vector.broadcast %cst_8 : f32 to vector<1x128xf32>
    %17 = arith.divf %16, %15 : vector<1x128xf32>
    %18 = vector.broadcast %17 : vector<1x128xf32> to vector<64x128xf32>
    %19 = arith.mulf %14, %18 : vector<64x128xf32>
    %20 = arith.cmpf one, %19, %19 : vector<64x128xf32>
    %cst_9 = arith.constant 0.000000e+00 : f32
    %21 = vector.broadcast %cst_9 : f32 to vector<64x128xf32>
    %22 = arith.select %20, %21, %19 : vector<64x128xi1>, vector<64x128xf32>
    %cst_10 = arith.constant 0x7F800000 : f32
    %23 = vector.broadcast %cst_10 : f32 to vector<64x128xf32>
    %24 = arith.cmpf oeq, %22, %23 : vector<64x128xf32>
    %cst_11 = arith.constant 3.40282347E+38 : f32
    %25 = vector.broadcast %cst_11 : f32 to vector<64x128xf32>
    %26 = arith.select %24, %25, %22 : vector<64x128xi1>, vector<64x128xf32>
    %cst_12 = arith.constant 0xFF800000 : f32
    %27 = vector.broadcast %cst_12 : f32 to vector<64x128xf32>
    %28 = arith.cmpf oeq, %26, %27 : vector<64x128xf32>
    %cst_13 = arith.constant -3.40282347E+38 : f32
    %29 = vector.broadcast %cst_13 : f32 to vector<64x128xf32>
    %30 = arith.select %28, %29, %26 : vector<64x128xi1>, vector<64x128xf32>
    %31 = arith.mulf %30, %30 : vector<64x128xf32>
    %cst_14 = arith.constant dense<0.000000e+00> : vector<64xf32>
    %32 = vector.multi_reduction <add>, %31, %cst_14 [1] : vector<64x128xf32> to vector<64xf32>
    %33 = vector.shape_cast %32 : vector<64xf32> to vector<64x1xf32>
    %cst_15 = arith.constant 1.000000e-24 : f32
    %34 = vector.broadcast %cst_15 : f32 to vector<64x1xf32>
    %35 = arith.maximumf %33, %34 : vector<64x1xf32>
    %36 = math.rsqrt %35 : vector<64x1xf32>
    %37 = vector.broadcast %36 : vector<64x1xf32> to vector<64x128xf32>
    %38 = arith.mulf %30, %37 : vector<64x128xf32>
    %c0_16 = arith.constant 0 : index
    %c0_17 = arith.constant 0 : index
    %39 = vector.load %arg4[%c0_16, %c0_17] : memref<128x64xf32, #tpu.memory_space<vmem>>, vector<128x64xf32>
    %cst_18 = arith.constant dense<0.000000e+00> : vector<64x64xf32>
    %40 = tpu.matmul %38, %39, %cst_18 {dimension_numbers = #tpu.dot_dimension_numbers<[1], [0], [0], [1], [0, 0, 1, 1], [], []>} : vector<64x128xf32>, vector<128x64xf32>, vector<64x64xf32> -> vector<64x64xf32>
    %c0_19 = arith.constant 0 : index
    %c0_20 = arith.constant 0 : index
    %41 = vector.load %arg5[%c0_19, %c0_20] : memref<1x64xf32, #tpu.memory_space<vmem>>, vector<1x64xf32>
    %42 = vector.broadcast %41 : vector<1x64xf32> to vector<64x64xf32>
    %43 = arith.addf %40, %42 : vector<64x64xf32>
    %44 = math.tanh %43 : vector<64x64xf32>
    %c0_21 = arith.constant 0 : index
    %c0_22 = arith.constant 0 : index
    %45 = vector.load %arg6[%c0_21, %c0_22] : memref<64x128xf32, #tpu.memory_space<vmem>>, vector<64x128xf32>
    %cst_23 = arith.constant dense<0.000000e+00> : vector<64x128xf32>
    %46 = tpu.matmul %44, %45, %cst_23 {dimension_numbers = #tpu.dot_dimension_numbers<[1], [0], [0], [1], [0, 0, 1, 1], [], []>} : vector<64x64xf32>, vector<64x128xf32>, vector<64x128xf32> -> vector<64x128xf32>
    %c0_24 = arith.constant 0 : index
    %c0_25 = arith.constant 0 : index
    %47 = vector.load %arg7[%c0_24, %c0_25] : memref<1x128xf32, #tpu.memory_space<vmem>>, vector<1x128xf32>
    %48 = vector.broadcast %47 : vector<1x128xf32> to vector<64x128xf32>
    %49 = arith.addf %46, %48 : vector<64x128xf32>
    %c0_26 = arith.constant 0 : index
    %c0_27 = arith.constant 0 : index
    %50 = vector.load %arg8[%c0_26, %c0_27] : memref<64x128xf32, #tpu.memory_space<vmem>>, vector<64x128xf32>
    tpu.vector_store %arg8[%c0_26, %c0_27], %49 {strides = array<i32>} : memref<64x128xf32, #tpu.memory_space<vmem>>, vector<64x128xf32>,
    return
  }
  func.func @transform_0(%arg0: i32) -> (i32, i32) {
    %c0_i32 = arith.constant 0 : i32
    %c0_i32_0 = arith.constant 0 : i32
    %c0_i32_1 = arith.constant 0 : i32
    return %c0_i32, %c0_i32_0 : i32, i32
  }
  func.func @transform_1(%arg0: i32) -> (i32, i32) {
    %c0_i32 = arith.constant 0 : i32
    %c0_i32_0 = arith.constant 0 : i32
    return %arg0, %c0_i32 : i32, i32
  }
  func.func @transform_2(%arg0: i32) -> (i32, i32) {
    %c0_i32 = arith.constant 0 : i32
    %c0_i32_0 = arith.constant 0 : i32
    %c0_i32_1 = arith.constant 0 : i32
    return %c0_i32, %c0_i32_0 : i32, i32
  }
  func.func @transform_3(%arg0: i32) -> (i32, i32) {
    %c0_i32 = arith.constant 0 : i32
    %c0_i32_0 = arith.constant 0 : i32
    %c0_i32_1 = arith.constant 0 : i32
    return %c0_i32, %c0_i32_0 : i32, i32
  }
  func.func @transform_4(%arg0: i32) -> (i32, i32) {
    %c0_i32 = arith.constant 0 : i32
    %c0_i32_0 = arith.constant 0 : i32
    %c0_i32_1 = arith.constant 0 : i32
    return %c0_i32, %c0_i32_0 : i32, i32
  }
  func.func @transform_5(%arg0: i32) -> (i32, i32) {
    %c0_i32 = arith.constant 0 : i32
    %c0_i32_0 = arith.constant 0 : i32
    %c0_i32_1 = arith.constant 0 : i32
    return %c0_i32, %c0_i32_0 : i32, i32
  }
  func.func @transform_6(%arg0: i32) -> (i32, i32) {
    %c0_i32 = arith.constant 0 : i32
    %c0_i32_0 = arith.constant 0 : i32
    %c0_i32_1 = arith.constant 0 : i32
    return %c0_i32, %c0_i32_0 : i32, i32
  }
  func.func @transform_7(%arg0: i32) -> (i32, i32) {
    %c0_i32 = arith.constant 0 : i32
    %c0_i32_0 = arith.constant 0 : i32
    return %arg0, %c0_i32 : i32, i32
  }
}

module attributes {stable_mosaic.version = 11 : i64} {
  func.func @_swe_kernel(%arg0: i32, %arg1: memref<128x128xbf16, #tpu.memory_space<vmem>>, %arg2: memref<64x1xf32, #tpu.memory_space<vmem>>, %arg3: memref<1x128xf32, #tpu.memory_space<vmem>>, %arg4: memref<128x64xf32, #tpu.memory_space<vmem>>, %arg5: memref<1x64xf32, #tpu.memory_space<vmem>>, %arg6: memref<64x128xf32, #tpu.memory_space<vmem>>, %arg7: memref<1x128xf32, #tpu.memory_space<vmem>>, %arg8: memref<64x128xf32, #tpu.memory_space<vmem>>) attributes {dimension_semantics = [#tpu.dimension_semantics<parallel>], iteration_bounds = array<i64: 2>, scalar_prefetch = 0 : i64, scratch_operands = 0 : i64, tpu.core_type = #tpu.core_type<tc>, window_params = [{pipeline_mode = #tpu.pipeline_mode<synchronous>, transform_indices = @transform_0, window_bounds = array<i64: 128, 128>}, {transform_indices = @transform_1, window_bounds = array<i64: 64, 1>}, {pipeline_mode = #tpu.pipeline_mode<synchronous>, transform_indices = @transform_2, window_bounds = array<i64: 1, 128>}, {pipeline_mode = #tpu.pipeline_mode<synchronous>, transform_indices = @transform_3, window_bounds = array<i64: 128, 64>}, {pipeline_mode = #tpu.pipeline_mode<synchronous>, transform_indices = @transform_4, window_bounds = array<i64: 1, 64>}, {pipeline_mode = #tpu.pipeline_mode<synchronous>, transform_indices = @transform_5, window_bounds = array<i64: 64, 128>}, {pipeline_mode = #tpu.pipeline_mode<synchronous>, transform_indices = @transform_6, window_bounds = array<i64: 1, 128>}, {transform_indices = @transform_7, window_bounds = array<i64: 64, 128>}]} {
    %c64_i32 = arith.constant 64 : i32
    %0 = arith.muli %arg0, %c64_i32 : i32
    %1 = tpu.assume_multiple %0, 64 : i32
    %c0 = arith.constant 0 : index
    %c0_0 = arith.constant 0 : index
    %2 = vector.load %arg1[%c0, %c0_0] : memref<128x128xbf16, #tpu.memory_space<vmem>>, vector<128x128xbf16>
    %3 = arith.index_cast %1 : i32 to index
    %c0_1 = arith.constant 0 : index
    %4 = vector.load %arg1[%3, %c0_1] : memref<128x128xbf16, #tpu.memory_space<vmem>>, vector<64x128xbf16>
    %cst = arith.constant dense<0.000000e+00> : vector<64x128xf32>
    %5 = tpu.matmul %4, %2, %cst {dimension_numbers = #tpu.dot_dimension_numbers<[1], [0], [0], [1], [0, 0, 1, 1], [], []>} : vector<64x128xbf16>, vector<128x128xbf16>, vector<64x128xf32> -> vector<64x128xf32>
    %6 = arith.truncf %5 : vector<64x128xf32> to vector<64x128xbf16>
    %cst_2 = arith.constant dense<0.000000e+00> : vector<64x128xf32>
    %7 = tpu.matmul %6, %2, %cst_2 {dimension_numbers = #tpu.dot_dimension_numbers<[1], [0], [0], [1], [0, 0, 1, 1], [], []>} : vector<64x128xbf16>, vector<128x128xbf16>, vector<64x128xf32> -> vector<64x128xf32>
    %8 = arith.extf %4 : vector<64x128xbf16> to vector<64x128xf32>
    %9 = arith.mulf %7, %8 : vector<64x128xf32>
    %c0_3 = arith.constant 0 : index
    %c0_4 = arith.constant 0 : index
    %10 = vector.load %arg2[%c0_3, %c0_4] : memref<64x1xf32, #tpu.memory_space<vmem>>, vector<64x1xf32>
    %cst_5 = arith.constant 1.000000e+00 : f32
    %11 = vector.broadcast %cst_5 : f32 to vector<64x1xf32>
    %12 = arith.divf %11, %10 : vector<64x1xf32>
    %13 = vector.broadcast %12 : vector<64x1xf32> to vector<64x128xf32>
    %14 = arith.mulf %9, %13 : vector<64x128xf32>
    %c0_6 = arith.constant 0 : index
    %c0_7 = arith.constant 0 : index
    %15 = vector.load %arg3[%c0_6, %c0_7] : memref<1x128xf32, #tpu.memory_space<vmem>>, vector<1x128xf32>
    %cst_8 = arith.constant 1.000000e+00 : f32
    %16 = vector.broadcast %cst_8 : f32 to vector<1x128xf32>
    %17 = arith.divf %16, %15 : vector<1x128xf32>
    %18 = vector.broadcast %17 : vector<1x128xf32> to vector<64x128xf32>
    %19 = arith.mulf %14, %18 : vector<64x128xf32>
    %20 = arith.cmpf one, %19, %19 : vector<64x128xf32>
    %cst_9 = arith.constant 0.000000e+00 : f32
    %21 = vector.broadcast %cst_9 : f32 to vector<64x128xf32>
    %22 = arith.select %20, %21, %19 : vector<64x128xi1>, vector<64x128xf32>
    %cst_10 = arith.constant 0x7F800000 : f32
    %23 = vector.broadcast %cst_10 : f32 to vector<64x128xf32>
    %24 = arith.cmpf oeq, %22, %23 : vector<64x128xf32>
    %cst_11 = arith.constant 3.40282347E+38 : f32
    %25 = vector.broadcast %cst_11 : f32 to vector<64x128xf32>
    %26 = arith.select %24, %25, %22 : vector<64x128xi1>, vector<64x128xf32>
    %cst_12 = arith.constant 0xFF800000 : f32
    %27 = vector.broadcast %cst_12 : f32 to vector<64x128xf32>
    %28 = arith.cmpf oeq, %26, %27 : vector<64x128xf32>
    %cst_13 = arith.constant -3.40282347E+38 : f32
    %29 = vector.broadcast %cst_13 : f32 to vector<64x128xf32>
    %30 = arith.select %28, %29, %26 : vector<64x128xi1>, vector<64x128xf32>
    %31 = arith.mulf %30, %30 : vector<64x128xf32>
    %cst_14 = arith.constant dense<0.000000e+00> : vector<64xf32>
    %32 = vector.multi_reduction <add>, %31, %cst_14 [1] : vector<64x128xf32> to vector<64xf32>
    %33 = vector.shape_cast %32 : vector<64xf32> to vector<64x1xf32>
    %cst_15 = arith.constant 1.000000e-24 : f32
    %34 = vector.broadcast %cst_15 : f32 to vector<64x1xf32>
    %35 = arith.maximumf %33, %34 : vector<64x1xf32>
    %36 = math.rsqrt %35 : vector<64x1xf32>
    %37 = vector.broadcast %36 : vector<64x1xf32> to vector<64x128xf32>
    %38 = arith.mulf %30, %37 : vector<64x128xf32>
    %c0_16 = arith.constant 0 : index
    %c0_17 = arith.constant 0 : index
    %39 = vector.load %arg4[%c0_16, %c0_17] : memref<128x64xf32, #tpu.memory_space<vmem>>, vector<128x64xf32>
    %cst_18 = arith.constant dense<0.000000e+00> : vector<64x64xf32>
    %40 = tpu.matmul %38, %39, %cst_18 {dimension_numbers = #tpu.dot_dimension_numbers<[1], [0], [0], [1], [0, 0, 1, 1], [], []>} : vector<64x128xf32>, vector<128x64xf32>, vector<64x64xf32> -> vector<64x64xf32>
    %c0_19 = arith.constant 0 : index
    %c0_20 = arith.constant 0 : index
    %41 = vector.load %arg5[%c0_19, %c0_20] : memref<1x64xf32, #tpu.memory_space<vmem>>, vector<1x64xf32>
    %42 = vector.broadcast %41 : vector<1x64xf32> to vector<64x64xf32>
    %43 = arith.addf %40, %42 : vector<64x64xf32>
    %44 = math.tanh %43 : vector<64x64xf32>
    %c0_21 = arith.constant 0 : index
    %c0_22 = arith.constant 0 : index
    %45 = vector.load %arg6[%c0_21, %c0_22] : memref<64x128xf32, #tpu.memory_space<vmem>>, vector<64x128xf32>
    %cst_23 = arith.constant dense<0.000000e+00> : vector<64x128xf32>
    %46 = tpu.matmul %44, %45, %cst_23 {dimension_numbers = #tpu.dot_dimension_numbers<[1], [0], [0], [1], [0, 0, 1, 1], [], []>} : vector<64x64xf32>, vector<64x128xf32>, vector<64x128xf32> -> vector<64x128xf32>
    %c0_24 = arith.constant 0 : index
    %c0_25 = arith.constant 0 : index
    %47 = vector.load %arg7[%c0_24, %c0_25] : memref<1x128xf32, #tpu.memory_space<vmem>>, vector<1x128xf32>
    %48 = vector.broadcast %47 : vector<1x128xf32> to vector<64x128xf32>
    %49 = arith.addf %46, %48 : vector<64x128xf32>
    %c0_26 = arith.constant 0 : index
    %c0_27 = arith.constant 0 : index
    %50 = vector.load %arg8[%c0_26, %c0_27] : memref<64x128xf32, #tpu.memory_space<vmem>>, vector<64x128xf32>
    tpu.vector_store %arg8[%c0_26, %c0_27], %49 {strides = array<i32>} : memref<64x128xf32, #tpu.memory_space<vmem>>, vector<64x128xf32>,
    return
  }
  func.func @transform_0(%arg0: i32) -> (i32, i32) {
    %c0_i32 = arith.constant 0 : i32
    %c0_i32_0 = arith.constant 0 : i32
    %c0_i32_1 = arith.constant 0 : i32
    return %c0_i32, %c0_i32_0 : i32, i32
  }
  func.func @transform_1(%arg0: i32) -> (i32, i32) {
    %c0_i32 = arith.constant 0 : i32
    %c0_i32_0 = arith.constant 0 : i32
    return %arg0, %c0_i32 : i32, i32
  }
  func.func @transform_2(%arg0: i32) -> (i32, i32) {
    %c0_i32 = arith.constant 0 : i32
    %c0_i32_0 = arith.constant 0 : i32
    %c0_i32_1 = arith.constant 0 : i32
    return %c0_i32, %c0_i32_0 : i32, i32
  }
  func.func @transform_3(%arg0: i32) -> (i32, i32) {
    %c0_i32 = arith.constant 0 : i32
    %c0_i32_0 = arith.constant 0 : i32
    %c0_i32_1 = arith.constant 0 : i32
    return %c0_i32, %c0_i32_0 : i32, i32
  }
  func.func @transform_4(%arg0: i32) -> (i32, i32) {
    %c0_i32 = arith.constant 0 : i32
    %c0_i32_0 = arith.constant 0 : i32
    %c0_i32_1 = arith.constant 0 : i32
    return %c0_i32, %c0_i32_0 : i32, i32
  }
  func.func @transform_5(%arg0: i32) -> (i32, i32) {
    %c0_i32 = arith.constant 0 : i32
    %c0_i32_0 = arith.constant 0 : i32
    %c0_i32_1 = arith.constant 0 : i32
    return %c0_i32, %c0_i32_0 : i32, i32
  }
  func.func @transform_6(%arg0: i32) -> (i32, i32) {
    %c0_i32 = arith.constant 0 : i32
    %c0_i32_0 = arith.constant 0 : i32
    %c0_i32_1 = arith.constant 0 : i32
    return %c0_i32, %c0_i32_0 : i32, i32
  }
  func.func @transform_7(%arg0: i32) -> (i32, i32) {
    %c0_i32 = arith.constant 0 : i32
    %c0_i32_0 = arith.constant 0 : i32
    return %arg0, %c0_i32 : i32, i32
  }
}

</mosaic_0001>

<bundles_post_ra>
// kernel: tpu_custom_call.1
= control target key start
LH: loop header
LB: loop body
LE: loop exit
PB: predicated region body
PF: predicated region fallthrough
CT: control target
= control target key end

     0   :  { %12 = vsyncpa [#allocation3], 0  ;;  %s1861_s0 = inlined_call_operand.vmem [shape: bf16[128,128], index: 0, kind: input, shape index: {}]   ;;  %s1862_s1 = inlined_call_operand.vmem [shape: f32[128,1], index: 1, kind: input, shape index: {}]   ;;  %s1863_s2 = inlined_call_operand.vmem [shape: f32[1,128], index: 2, kind: input, shape index: {}]   ;;  %s1864_s3 = inlined_call_operand.vmem [shape: f32[128,64], index: 3, kind: input, shape index: {}]   ;;  %s1865_s4 = inlined_call_operand.vmem [shape: f32[1,64], index: 4, kind: input, shape index: {}]   ;;  %s1866_s5 = inlined_call_operand.vmem [shape: f32[64,128], index: 5, kind: input, shape index: {}]   ;;  %s1867_s6 = inlined_call_operand.vmem [shape: f32[1,128], index: 6, kind: input, shape index: {}]   ;;  %s1868_s7 = inlined_call_operand.hbm [shape: f32[128,128], index: 7, kind: output, shape index: {}]  }
   0x1   :  { %14 = vsyncpa [#allocation3 + $0x1], 0  ;;  %s1571_s24 = smov 0   ;;  %s1573_s25 = smov 0  }
   0x2   :  { %s1575_s26 = smov 0   ;;  %s1577_s27 = smov 0  }
   0x3 LB: > { %s1592_s28 = sadd.s32 4294967295, %s1525_s27   ;;  %s1084_s29 = sadd.s32 4294967294, %s1525_s27   ;;  %s1525_s27 = sphi %s1577_s27, %s1874_s27   ;;  %s1521_s26 = sphi %s1575_s26, %s1873_s26   ;;  %s1517_s25 = sphi %s1573_s25, %s1872_s25   ;;  %s1513_s24 = sphi %s1571_s24, %s1871_s24  }
   0x4   : > { %s1596_s30 = sadd.s32 1, %s1525_s27   ;;  %s179_s8 = sadd.s32 1, %s1521_s26 }
   0x5   : > { %s176_s9 = ssub.s32 %s1525_s27, %s1596_s30  ;;  %p189_p0 = scmp.ne.s32.totalorder %s1521_s26, %s1517_s25 }
   0x6   : > { %p177_p1 = scmp.eq.s32.totalorder %s176_s9, 0  ;;  %p190_p2 = scmp.eq.s32.totalorder %s1592_s28, 1 }
   0x7   : > { %p195_p3 = scmp.ne.s32.totalorder %s1517_s25, %s1513_s24  ;;  %p196_p4 = scmp.eq.s32.totalorder %s1084_s29, 1 }
   0x8   : > { %s1607_s10 = scalar_select %p177_p1, %s1521_s26, %s179_s8  }
   0x9   : > { %p1609_p5 = por %p190_p2, %p189_p0  ;;  %p1613_p6 = por %p196_p4, %p195_p3 }
   0xa   : > { %p1087_p7 = scmp.ge.s32.totalorder %s1525_s27, 1  ;;  %p241_p8 = scmp.lt.s32.totalorder %s1525_s27, 3 }
   0xc   : > { %p242_p9 = pnand %p1087_p7, %p241_p8 }
   0xd   : > { %v1397_v0 = vld [vmem:[%s1861_s0] sm:$0xff] (!%p242_p9)   ;;  %s1091_s15 = sshll.u32 (!%p242_p9), %s1592_s28, 6  ;;  %v1398_v1 = vld [vmem:[%s1861_s0 + $0x8] sm:$0xff] (!%p242_p9)   ;;  %v1399_v2 = vld [vmem:[%s1861_s0 + $0x10] sm:$0xff] (!%p242_p9)   ;;  %s1089_s21 = sshll.u32 (!%p242_p9), %s1592_s28, 3  ;;  %v1527_v12 = vmov (!%p242_p9), 0   ;;  %v608_v54 = vlaneseq (!%p242_p9) }
   0xe   : > { %245 = sbr.rel (%p242_p9) target bundleno = 1121 (0x461), region = 48  ;;  %s298_s18 = sshra.s32 (!%p242_p9), %s1091_s15, 3  ;;  %1185 = vmatprep.subr.bf16.mxu0 (!%p242_p9), %v1397_v0  ;;  %1209 = vmatprep.subr.bf16.mxu1 (!%p242_p9), %v1397_v0  ;;  %v1400_v3 = vld [vmem:[%s1861_s0 + $0x18] sm:$0xff] (!%p242_p9)   ;;  %v1401_v5 = vld [vmem:[%s1861_s0 + $0x20] sm:$0xff] (!%p242_p9)   ;;  %v1402_v6 = vld [vmem:[%s1861_s0 + $0x28] sm:$0xff] (!%p242_p9)  }
   0xf   : > { %s1092_s19 = sshll.u32 (!%p242_p9), %s298_s18, 2  ;;  %1186 = vmatpush3.bf16.msra.mxu0 (!%p242_p9), %v1397_v0  ;;  %1210 = vmatpush3.bf16.msra.mxu1 (!%p242_p9), %v1397_v0  ;;  %v1403_v7 = vld [vmem:[%s1861_s0 + $0x30] sm:$0xff] (!%p242_p9)   ;;  %v1404_v8 = vld [vmem:[%s1861_s0 + $0x38] sm:$0xff] (!%p242_p9)   ;;  %p274_p10 = scmp.lt.s32.totalorder (!%p242_p9), %s1089_s21, 15  ;;  %v717_v41 = vld [vmem:[%s1864_s3] sm:$0xff] (!%p242_p9)  ;;  %v609_v56 = vshrl.u32 (!%p242_p9), %v608_v54, 7 }
  0x10   : > { %1187 = vmatprep.subr.bf16.mxu0 (!%p242_p9), %v1398_v1  ;;  %1211 = vmatprep.subr.bf16.mxu1 (!%p242_p9), %v1398_v1  ;;  %s1632_s29 = scalar_lea.vmem (!%p242_p9), %s1861_s0, %s1092_s19  ;;  %v718_v42 = vld [vmem:[%s1864_s3 + $0x8] sm:$0xff] (!%p242_p9)  ;;  %v719_v43 = vld [vmem:[%s1864_s3 + $0x10] sm:$0xff] (!%p242_p9)  ;;  %v720_v45 = vld [vmem:[%s1864_s3 + $0x18] sm:$0xff] (!%p242_p9)  ;;  %s1120_s13 = sshll.u32 (!%p242_p9), %s1592_s28, 10 }
  0x11   : > { %v1638_v4 = vld [vmem:[%s1632_s29] sm:$0xff] (!%p242_p9)   ;;  %v1654_v9 = vld [vmem:[%s1632_s29 + $0x8] sm:$0xff] (!%p242_p9)   ;;  %v1657_v10 = vld [vmem:[%s1632_s29 + $0x10] sm:$0xff] (!%p242_p9)   ;;  %1395 = vset.pattern.permute.xlu0 (!%p242_p9), %v1527_v12  ;;  %1396 = vset.pattern.permute.xlu1 (!%p242_p9), %v1527_v12  ;;  %v1305_v44 = vpack.c.bf16 (!%p242_p9), %v718_v42, %v717_v41  ;;  %v1309_v46 = vpack.c.bf16 (!%p242_p9), %v720_v45, %v719_v43  ;;  %v610_v59 = vsub.s32 (!%p242_p9), 0, %v609_v56  ;;  %s1814_s17 = scalar_lea.hbm (!%p242_p9), %s1868_s7, %s1120_s13  ;;  %s1528_s19 = smov (!%p242_p9), [#allocation2]  }
  0x12   : > { %1201 = vmatprep.mubr.bf16.mxu0 (!%p242_p9), %v1638_v4  ;;  %v1662_v11 = vld [vmem:[%s1632_s29 + $0x18] sm:$0xff] (!%p242_p9)   ;;  %v721_v47 = vld [vmem:[%s1864_s3 + $0x20] sm:$0xff] (!%p242_p9)  ;;  %v722_v48 = vld [vmem:[%s1864_s3 + $0x28] sm:$0xff] (!%p242_p9)  ;;  %v518_v58 = vunpack.c.l.bf16 (!%p242_p9), %v1654_v9  ;;  %v516_v61 = vunpack.c.l.bf16 (!%p242_p9), %v1638_v4  ;;  %v519_v63 = vunpack.c.h.bf16 (!%p242_p9), %v1654_v9  ;;  %v517_v0 = vunpack.c.h.bf16 (!%p242_p9), %v1638_v4  ;;  %s1467_s20 = sshll.u32 (!%p242_p9), %s1528_s19, 4  ;;  %s1468_s20 = int_to_ptr.vmem [resolvable:$false] %s1467_s20 }
  0x13   : > { %1188 = vmatpush3.bf16.msra.mxu0 (!%p242_p9), %v1398_v1  ;;  %1212 = vmatpush3.bf16.msra.mxu1 (!%p242_p9), %v1398_v1  ;;  %v1313_v49 = vpack.c.bf16 (!%p242_p9), %v722_v48, %v721_v47  ;;  %v723_v50 = vld [vmem:[%s1864_s3 + $0x30] sm:$0xff] (!%p242_p9)  ;;  %v724_v51 = vld [vmem:[%s1864_s3 + $0x38] sm:$0xff] (!%p242_p9)  ;;  %v604_v53 = vld [vmem:[%s1863_s2] sm:$0x1] (!%p242_p9) }
  0x14   : > { %1189 = vmatprep.subr.bf16.mxu0 (!%p242_p9), %v1399_v2  ;;  %1213 = vmatprep.subr.bf16.mxu1 (!%p242_p9), %v1399_v2  ;;  %v1317_v52 = vpack.c.bf16 (!%p242_p9), %v724_v51, %v723_v50 }
  0x15   : > { %s1876_s21 = smov (!%p274_p10, %s1089_s21), 15 }
  0x16   : > { %s1090_s22 = sshll.u32 %s1876_s21, 3  ;;  %s1469_s21 = scalar_lea.vmem %s1468_s20, 2048 }
  0x17   : > { %1190 = vmatpush3.bf16.msra.mxu0 %v1399_v2  ;;  %1214 = vmatpush3.bf16.msra.mxu1 %v1399_v2  ;;  %s277_s9 = scalar_lea.vmem %s1862_s1, %s1090_s22  ;;  %s270_s22 = sand.u32 1, %s1517_s25  }
  0x18   : > { %1191 = vmatprep.subr.bf16.mxu0 %v1400_v3  ;;  %1215 = vmatprep.subr.bf16.mxu1 %v1400_v3  ;;  %v532_v13 = vld [vmem:[%s277_s9] sm:$0xff]  ;;  %v534_v14 = vld [vmem:[%s277_s9 + $0x10] sm:$0xff]  ;;  %v533_v15 = vld [vmem:[%s277_s9 + $0x8] sm:$0xff]  ;;  %s1088_s23 = sshll.u32 %s270_s22, 6  ;;  %s1820_s28 = scalar_lea.sflag [#allocation3], %s270_s22 }
  0x19   : > { %1413 = vrcp.f32 %v532_v13  ;;  %v535_v16 = vld [vmem:[%s277_s9 + $0x18] sm:$0xff]  ;;  %v536_v17 = vld [vmem:[%s277_s9 + $0x20] sm:$0xff]  ;;  %v537_v18 = vld [vmem:[%s277_s9 + $0x28] sm:$0xff]  ;;  %s272_s29 = scalar_lea.vmem [#allocation2], %s1088_s23 }
  0x1a   : > { %1415 = vrcp.f32 %v534_v14  ;;  %v538_v19 = vld [vmem:[%s277_s9 + $0x30] sm:$0xff]  ;;  %v539_v20 = vld [vmem:[%s277_s9 + $0x38] sm:$0xff]  ;;  %s1020_s14 = sshll.u32 %s272_s29, 4  ;;  %s1816_s14 = int_to_ptr.vmem [resolvable:$true] %s1020_s14 }
  0x1b   : > { %1192 = vmatpush3.bf16.msra.mxu0 %v1400_v3  ;;  %1216 = vmatpush3.bf16.msra.mxu1 %v1400_v3  ;;  %1417 = vrcp.f32 %v533_v15  ;;  %s1463_s18 = scalar_lea.vmem %s1816_s14, 1024  ;;  %p1470_p0 = scmp.lt.s32.totalorder %s1816_s14, %s1468_s20 }
  0x1c   : > { %1193 = vmatprep.subr.bf16.mxu0 %v1401_v5  ;;  %1217 = vmatprep.subr.bf16.mxu1 %v1401_v5  ;;  %1419 = vrcp.f32 %v535_v16  ;;  %p1464_p11 = scmp.ne.s32.totalorder %s1816_s14, %s1463_s18  ;;  %p1471_p1 = scmp.lt.s32.totalorder %s1469_s21, %s1463_s18 }
  0x1d   : > { %1421 = vrcp.f32 %v536_v17 }
  0x1e   : > { %1423 = vrcp.f32 %v537_v18  ;;  %p1465_p12 = pnand %p1464_p11, %p1609_p5  ;;  %p1472_p2 = por %p1471_p1, %p1470_p0 }
  0x1f   : > { %1194 = vmatpush3.bf16.msra.mxu0 %v1401_v5  ;;  %1218 = vmatpush3.bf16.msra.mxu1 %v1401_v5  ;;  %1425 = vrcp.f32 %v538_v19 }
  0x20   : > { %1195 = vmatprep.subr.bf16.mxu0 %v1402_v6  ;;  %1219 = vmatprep.subr.bf16.mxu1 %v1402_v6  ;;  %1427 = vrcp.f32 %v539_v20  ;;  %v522_v20 = vunpack.c.l.bf16 %v1662_v11  ;;  %p1466_p13 = pneg %p1465_p12 }
  0x21   : > { %1429 = vrcp.f32 %v604_v53 }
  0x22   : > { %p1473_p3 = pnand %p1472_p2, %p1466_p13 }
  0x23   : > { %1196 = vmatpush3.bf16.msra.mxu0 %v1402_v6  ;;  %1220 = vmatpush3.bf16.msra.mxu1 %v1402_v6  ;;  %v1414_v21 = vpop.eup %1413 }
  0x24   : > { %1197 = vmatprep.subr.bf16.mxu0 %v1403_v7  ;;  %1221 = vmatprep.subr.bf16.mxu1 %v1403_v7  ;;  %v1416_v22 = vpop.eup %1415 }
  0x25   : > { %558 = vperm.xlu0 %1395, %v1414_v21   ;;  %v1418_v23 = vpop.eup %1417  ;;  %568 = vperm.xlu1 %1396, %v1416_v22   ;;  %v520_v22 = vunpack.c.l.bf16 %v1657_v10 }
  0x26   : > { %v1420_v24 = vpop.eup %1419 }
  0x27   : > { %1198 = vmatpush3.bf16.msra.mxu0 %v1403_v7  ;;  %1222 = vmatpush3.bf16.msra.mxu1 %v1403_v7  ;;  %v1422_v25 = vpop.eup %1421 }
  0x28   : > { %1199 = vmatprep.subr.bf16.mxu0 %v1404_v8  ;;  %1223 = vmatprep.subr.bf16.mxu1 %v1404_v8  ;;  %v1424_v26 = vpop.eup %1423 }
  0x29   : > { %563 = vperm.xlu0 %1395, %v1418_v23   ;;  %573 = vperm.xlu1 %1396, %v1420_v24   ;;  %v1426_v27 = vpop.eup %1425  ;;  %v523_v24 = vunpack.c.h.bf16 %v1662_v11 }
  0x2a   : > { %v1428_v28 = vpop.eup %1427 }
  0x2b   : > { %1200 = vmatpush3.bf16.msra.mxu0 %v1404_v8  ;;  %1224 = vmatpush3.bf16.msra.mxu1 %v1404_v8  ;;  %v1430_v60 = vpop.eup %1429 }
  0x2c   : > { %1306 = vmatprep.subr.bf16.mxu0 %v1305_v44  ;;  %v611_v5 = vrot.slane %v1430_v60, %v610_v59 }
  0x2d   : > { %578 = vperm.xlu0 %1395, %v1422_v25   ;;  %583 = vperm.xlu1 %1396, %v1424_v26  }
  0x2e   : > { %1202 = vmatmul.mubr.bf16.vlgmr.msra.gmra.mrb[0].mxu0 %v1654_v9 }
  0x2f   : > { %1205 = vmatprep.mubr.bf16.mxu0 %v1657_v10  ;;  %1308 = vmatpush3.bf16.msra.mxu0 %v1305_v44 }
  0x30   : > { %1310 = vmatprep.subr.bf16.mxu0 %v1309_v46 }
  0x31   : > { %588 = vperm.xlu0 %1395, %v1426_v27   ;;  %593 = vperm.xlu1 %1396, %v1428_v28   ;;  %v521_v27 = vunpack.c.h.bf16 %v1657_v10 }
  0x33   : > { %1312 = vmatpush3.bf16.msra.mxu0 %v1309_v46 }
  0x34   : > { %1314 = vmatprep.subr.bf16.mxu0 %v1313_v49 }
  0x36   : > { %1206 = vmatmul.mubr.bf16.gmra.mrb[4].mxu0 %v1662_v11 }
  0x37   : > { %1316 = vmatpush3.bf16.msra.mxu0 %v1313_v49 }
  0x38   : > { %1318 = vmatprep.subr.bf16.mxu0 %v1317_v52 }
  0x3b   : > { %1320 = vmatpush3.bf16.msra.mxu0 %v1317_v52 }
  0xa4   : > { %v559_v55 = vpop.permute.xlu0 %558  ;;  %v569_v57 = vpop.permute.xlu1 %568 }
  0xa8   : > { %v564_v62 = vpop.permute.xlu0 %563  ;;  %v574_v1 = vpop.permute.xlu1 %573 }
  0xac   : > { %v579_v15 = vpop.permute.xlu0 %578  ;;  %v584_v4 = vpop.permute.xlu1 %583 }
 0x101   : > { %v1203_v29 = vpop.f32.mrb[0].mxu0 }
 0x102   : > { %v416_v30 = vpop.f32.mrb[1].mxu0 }
 0x103   : > { %v1204_v31 = vpop.f32.mrb[2].mxu0 }
 0x104   : > { %v448_v32 = vpack.c.bf16 %v1204_v31, %v1203_v29  ;;  %v419_v33 = vpop.f32.mrb[3].mxu0 }
 0x105   : > { %v447_v34 = vpack.c.bf16 %v419_v33, %v416_v30 }
 0x107   : > { %1225 = vmatprep.mubr.bf16.mxu1 %v447_v34 }
 0x108   : > { %1226 = vmatmul.mubr.bf16.vlgmr.msra.gmra.mrb[0].mxu1 %v448_v32  ;;  %v589_v32 = vpop.permute.xlu0 %588 }
 0x109   : > { %v1207_v35 = vpop.f32.mrb[4].mxu0 }
 0x10a   : > { %v432_v36 = vpop.f32.mrb[5].mxu0 }
 0x10b   : > { %v1208_v37 = vpop.f32.mrb[6].mxu0 }
 0x10c   : > { %v450_v38 = vpack.c.bf16 %v1208_v37, %v1207_v35  ;;  %v435_v39 = vpop.f32.mrb[7].mxu0 }
 0x10d   : > { %v449_v40 = vpack.c.bf16 %v435_v39, %v432_v36 }
 0x10f   : > { %1229 = vmatprep.mubr.bf16.mxu1 %v449_v40  ;;  %v594_v40 = vpop.permute.xlu1 %593 }
 0x110   : > { %1230 = vmatmul.mubr.bf16.gmra.mrb[4].mxu1 %v450_v38 }
 0x1db   : > { %v1227_v2 = vpop.f32.mrb[0].mxu1 }
 0x1dc   : > { %v526_v3 = vmul.f32 %v1227_v2, %v518_v58  ;;  %v485_v6 = vpop.f32.mrb[1].mxu1 }
 0x1dd   : > { %v524_v7 = vmul.f32 %v516_v61, %v485_v6  ;;  %v1228_v8 = vpop.f32.mrb[2].mxu1 }
 0x1de   : > { %v598_v12 = vmul.f32 %v569_v57, %v526_v3  ;;  %v527_v13 = vmul.f32 %v1228_v8, %v519_v63  ;;  %v488_v14 = vpop.f32.mrb[3].mxu1 }
 0x1df   : > { %v596_v16 = vmul.f32 %v559_v55, %v524_v7  ;;  %v525_v17 = vmul.f32 %v517_v0, %v488_v14 }
 0x1e0   : > { %v615_v18 = vmul.f32 %v611_v5, %v598_v12  ;;  %v599_v19 = vmul.f32 %v574_v1, %v527_v13 }
 0x1e1   : > { %v613_v9 = vmul.f32 %v611_v5, %v596_v16  ;;  %v597_v21 = vmul.f32 %v564_v62, %v525_v17  ;;  %v726_v16 = vld [vmem:[%s1864_s3 + $0x48] sm:$0xff] }
 0x1e2   : > { %v616_v23 = vmul.f32 %v611_v5, %v599_v19  ;;  %vm623_vm0 = vcmp.ne.f32.partialorder %v615_v18, %v615_v18  ;;  %v728_v19 = vld [vmem:[%s1864_s3 + $0x58] sm:$0xff] }
 0x1e3   : > { %v614_v25 = vmul.f32 %v611_v5, %v597_v21  ;;  %v1231_v26 = vpop.f32.mrb[4].mxu1  ;;  %vm621_vm1 = vcmp.ne.f32.partialorder %v613_v9, %v613_v9  ;;  %v631_v28 = vsel %vm623_vm0, 0.0, %v615_v18  ;;  %v727_v18 = vld [vmem:[%s1864_s3 + $0x50] sm:$0xff]  ;;  %v730_v21 = vld [vmem:[%s1864_s3 + $0x68] sm:$0xff] }
 0x1e4   : > { %v530_v29 = vmul.f32 %v1231_v26, %v522_v20  ;;  %v501_v30 = vpop.f32.mrb[5].mxu1  ;;  %v629_v31 = vsel %vm621_vm1, 0.0, %v613_v9  ;;  %vm639_vm2 = vcmp.eq.f32.partialorder %v631_v28, inf  ;;  %vm624_vm3 = vcmp.ne.f32.partialorder %v616_v23, %v616_v23  ;;  %v729_v9 = vld [vmem:[%s1864_s3 + $0x60] sm:$0xff] }
 0x1e5   : > { %v528_v33 = vmul.f32 %v520_v22, %v501_v30  ;;  %v1232_v34 = vpop.f32.mrb[6].mxu1  ;;  %vm637_vm4 = vcmp.eq.f32.partialorder %v629_v31, inf  ;;  %vm622_vm5 = vcmp.ne.f32.partialorder %v614_v25, %v614_v25  ;;  %v647_v35 = vsel %vm639_vm2, 3.4028235e+38, %v631_v28  ;;  %v731_v22 = vld [vmem:[%s1864_s3 + $0x70] sm:$0xff] }
 0x1e6   : > { %v602_v36 = vmul.f32 %v589_v32, %v530_v29  ;;  %v531_v11 = vmul.f32 %v1232_v34, %v523_v24  ;;  %v504_v37 = vpop.f32.mrb[7].mxu1  ;;  %v645_v38 = vsel %vm637_vm4, 3.4028235e+38, %v629_v31  ;;  %v630_v39 = vsel %vm622_vm5, 0.0, %v614_v25 }
 0x1e7   : > { %v600_v10 = vmul.f32 %v579_v15, %v528_v33  ;;  %v529_v41 = vmul.f32 %v521_v27, %v504_v37  ;;  %vm653_vm6 = vcmp.eq.f32.partialorder %v645_v38, -inf  ;;  %vm638_vm7 = vcmp.eq.f32.partialorder %v630_v39, inf  ;;  %v725_v15 = vld [vmem:[%s1864_s3 + $0x40] sm:$0xff] }
 0x1e8   : > { %v619_v42 = vmul.f32 %v611_v5, %v602_v36  ;;  %v603_v43 = vmul.f32 %v594_v40, %v531_v11  ;;  %v1704_v44 = vsel %vm653_vm6, -3.4028235e+38, %v645_v38  ;;  %v646_v45 = vsel %vm638_vm7, 3.4028235e+38, %v630_v39 }
 0x1e9   : > { %v617_v46 = vmul.f32 %v611_v5, %v600_v10  ;;  %v601_v47 = vmul.f32 %v584_v4, %v529_v41  ;;  %v669_v48 = vmul.f32 %v1704_v44, %v1704_v44  ;;  %vm654_vm8 = vcmp.eq.f32.partialorder %v646_v45, -inf }
 0x1ea   : > { %v620_v49 = vmul.f32 %v611_v5, %v603_v43  ;;  %v1708_v50 = vsel %vm654_vm8, -3.4028235e+38, %v646_v45  ;;  %vm655_vm9 = vcmp.eq.f32.partialorder %v647_v35, -inf  ;;  %v632_v51 = vsel %vm624_vm3, 0.0, %v616_v23  ;;  %v732_v23 = vld [vmem:[%s1864_s3 + $0x78] sm:$0xff] }
 0x1eb   : > { %v618_v52 = vmul.f32 %v611_v5, %v601_v47  ;;  %677 = vadd.xlane.f32.xlu0 %v669_v48  ;;  %v670_v53 = vmul.f32 %v1708_v50, %v1708_v50  ;;  %v1713_v54 = vsel %vm655_vm9, -3.4028235e+38, %v647_v35  ;;  %vm640_vm10 = vcmp.eq.f32.partialorder %v632_v51, inf }
 0x1ec   : > { %v671_v55 = vmul.f32 %v1713_v54, %v1713_v54  ;;  %v648_v56 = vsel %vm640_vm10, 3.4028235e+38, %v632_v51  ;;  %vm625_vm11 = vcmp.ne.f32.partialorder %v617_v46, %v617_v46  ;;  %vm627_vm12 = vcmp.ne.f32.partialorder %v619_v42, %v619_v42 }
 0x1ed   : > { %679 = vadd.xlane.f32.xlu1 %v670_v53  ;;  %vm656_vm13 = vcmp.eq.f32.partialorder %v648_v56, -inf  ;;  %v633_v57 = vsel %vm625_vm11, 0.0, %v617_v46  ;;  %vm626_vm14 = vcmp.ne.f32.partialorder %v618_v52, %v618_v52  ;;  %v635_v58 = vsel %vm627_vm12, 0.0, %v619_v42 }
 0x1ee   : > { %v1717_v59 = vsel %vm656_vm13, -3.4028235e+38, %v648_v56  ;;  %vm641_vm15 = vcmp.eq.f32.partialorder %v633_v57, inf  ;;  %v634_v60 = vsel %vm626_vm14, 0.0, %v618_v52  ;;  %vm643_vm0 = vcmp.eq.f32.partialorder %v635_v58, inf  ;;  %v854_v56 = vld [vmem:[%s1866_s5 + $0x8] sm:$0xff] }
 0x1ef   : > { %681 = vadd.xlane.f32.xlu0 %v671_v55  ;;  %v649_v61 = vsel %vm641_vm15, 3.4028235e+38, %v633_v57  ;;  %vm642_vm1 = vcmp.eq.f32.partialorder %v634_v60, inf  ;;  %v651_v62 = vsel %vm643_vm0, 3.4028235e+38, %v635_v58  ;;  %vm628_vm4 = vcmp.ne.f32.partialorder %v620_v49, %v620_v49  ;;  %v853_v55 = vld [vmem:[%s1866_s5] sm:$0xff] }
 0x1f0   : > { %vm657_vm2 = vcmp.eq.f32.partialorder %v649_v61, -inf  ;;  %v650_v63 = vsel %vm642_vm1, 3.4028235e+38, %v634_v60  ;;  %vm659_vm3 = vcmp.eq.f32.partialorder %v651_v62, -inf  ;;  %v672_v0 = vmul.f32 %v1717_v59, %v1717_v59  ;;  %v855_v58 = vld [vmem:[%s1866_s5 + $0x10] sm:$0xff] }
 0x1f1   : > { %v1721_v1 = vsel %vm657_vm2, -3.4028235e+38, %v649_v61  ;;  %vm658_vm5 = vcmp.eq.f32.partialorder %v650_v63, -inf  ;;  %v636_v2 = vsel %vm628_vm4, 0.0, %v620_v49  ;;  %v1727_v6 = vsel %vm659_vm3, -3.4028235e+38, %v651_v62 }
 0x1f2   : > { %v673_v3 = vmul.f32 %v1721_v1, %v1721_v1  ;;  %v1725_v5 = vsel %vm658_vm5, -3.4028235e+38, %v650_v63  ;;  %vm644_vm6 = vcmp.eq.f32.partialorder %v636_v2, inf  ;;  %v675_v12 = vmul.f32 %v1727_v6, %v1727_v6  ;;  %v857_v61 = vld [vmem:[%s1866_s5 + $0x20] sm:$0xff]  ;;  %v858_v62 = vld [vmem:[%s1866_s5 + $0x28] sm:$0xff] }
 0x1f3   : > { %683 = vadd.xlane.f32.xlu0 %v672_v0  ;;  %v652_v7 = vsel %vm644_vm6, 3.4028235e+38, %v636_v2  ;;  %v674_v8 = vmul.f32 %v1725_v5, %v1725_v5  ;;  %v1321_v17 = vpack.c.bf16 %v726_v16, %v725_v15  ;;  %v1325_v20 = vpack.c.bf16 %v728_v19, %v727_v18  ;;  %v859_v0 = vld [vmem:[%s1866_s5 + $0x30] sm:$0xff] }
 0x1f4   : > { %685 = vadd.xlane.f32.xlu1 %v673_v3  ;;  %vm660_vm7 = vcmp.eq.f32.partialorder %v652_v7, -inf  ;;  %v1329_v4 = vpack.c.bf16 %v730_v21, %v729_v9  ;;  %v1333_v24 = vpack.c.bf16 %v732_v23, %v731_v22  ;;  %v1337_v57 = vpack.c.bf16 %v854_v56, %v853_v55  ;;  %v1105_v3 = vld [vmem:[%s1865_s4] ss:$0 sm:$0xff] }
 0x1f5   : > { %v1733_v13 = vsel %vm660_vm7, -3.4028235e+38, %v652_v7  ;;  %1322 = vmatprep.subr.bf16.mxu0 %v1321_v17  ;;  %v1345_v63 = vpack.c.bf16 %v858_v62, %v857_v61  ;;  %vm868_vm8 = vcmask 523264  }
 0x1f6   : > { %v676_v14 = vmul.f32 %v1733_v13, %v1733_v13  ;;  %1324 = vmatpush3.bf16.msra.mxu0 %v1321_v17  ;;  %1338 = vmatprep.subr.bf16.mxu1 %v1337_v57 }
 0x1f7   : > { %687 = vadd.xlane.f32.xlu0 %v674_v8  ;;  %1326 = vmatprep.subr.bf16.mxu0 %v1325_v20 }
 0x1f8   : > { %689 = vadd.xlane.f32.xlu1 %v675_v12  ;;  %1340 = vmatpush3.bf16.msra.mxu1 %v1337_v57 }
 0x1fa   : > { %1328 = vmatpush3.bf16.msra.mxu0 %v1325_v20 }
 0x1fb   : > { %691 = vadd.xlane.f32.xlu0 %v676_v14  ;;  %1330 = vmatprep.subr.bf16.mxu0 %v1329_v4 }
 0x1fe   : > { %1332 = vmatpush3.bf16.msra.mxu0 %v1329_v4 }
 0x1ff   : > { %1334 = vmatprep.subr.bf16.mxu0 %v1333_v24 }
 0x202   : > { %1336 = vmatpush3.bf16.msra.mxu0 %v1333_v24 }
 0x278   : > { %v678_v25 = vpop.xlane.xlu0 %677 }
 0x279   : > { %v693_v26 = vmax.f32 %v678_v25, 1e-24 }
 0x27a   : > { %v680_v27 = vpop.xlane.xlu1 %679 }
 0x27b   : > { %1431 = vrsqrt.f32 %v693_v26  ;;  %v694_v28 = vmax.f32 %v680_v27, 1e-24 }
 0x27c   : > { %v682_v29 = vpop.xlane.xlu0 %681 }
 0x27d   : > { %1433 = vrsqrt.f32 %v694_v28  ;;  %v695_v30 = vmax.f32 %v682_v29, 1e-24 }
 0x27f   : > { %1435 = vrsqrt.f32 %v695_v30  ;;  %v1106_v30 = vld [vmem:[%s1867_s6] ss:$0 sm:$0xff] }
 0x280   : > { %v684_v31 = vpop.xlane.xlu0 %683 }
 0x281   : > { %v686_v32 = vpop.xlane.xlu1 %685  ;;  %v696_v33 = vmax.f32 %v684_v31, 1e-24 }
 0x282   : > { %v697_v34 = vmax.f32 %v686_v32, 1e-24 }
 0x283   : > { %1437 = vrsqrt.f32 %v696_v33 }
 0x284   : > { %1439 = vrsqrt.f32 %v697_v34  ;;  %v688_v35 = vpop.xlane.xlu0 %687 }
 0x285   : > { %v1432_v36 = vpop.eup %1431  ;;  %v690_v11 = vpop.xlane.xlu1 %689  ;;  %v698_v37 = vmax.f32 %v688_v35, 1e-24 }
 0x286   : > { %v699_v38 = vmax.f32 %v690_v11, 1e-24  ;;  %v709_v39 = vmul.f32 %v1432_v36, %v1704_v44 }
 0x287   : > { %v1434_v40 = vpop.eup %1433  ;;  %1441 = vrsqrt.f32 %v698_v37 }
 0x288   : > { %1443 = vrsqrt.f32 %v699_v38  ;;  %1265 = vmatprep.mubr.f32.mxu0 %v709_v39  ;;  %v692_v10 = vpop.xlane.xlu0 %691  ;;  %v710_v41 = vmul.f32 %v1434_v40, %v1708_v50 }
 0x289   : > { %v1436_v42 = vpop.eup %1435  ;;  %v700_v43 = vmax.f32 %v692_v10, 1e-24 }
 0x28a   : > { %1266 = vmatmul.mubr.f32.vlgmr.msra.gmra.mrb[8].mxu0 %v710_v41  ;;  %v711_v45 = vmul.f32 %v1436_v42, %v1713_v54 }
 0x28b   : > { %1445 = vrsqrt.f32 %v700_v43 }
 0x28c   : > { %1268 = vmatprep.mubr.f32.mxu0 %v711_v45 }
 0x28d   : > { %v1438_v46 = vpop.eup %1437 }
 0x28e   : > { %v1440_v47 = vpop.eup %1439  ;;  %v712_v48 = vmul.f32 %v1438_v46, %v1717_v59  ;;  %v856_v59 = vld [vmem:[%s1866_s5 + $0x18] sm:$0xff] }
 0x28f   : > { %v713_v44 = vmul.f32 %v1440_v47, %v1721_v1  ;;  %v1341_v60 = vpack.c.bf16 %v856_v59, %v855_v58  ;;  %v860_v1 = vld [vmem:[%s1866_s5 + $0x38] sm:$0xff] }
 0x290   : > { %1269 = vmatmul.mubr.f32.gmra.mrb[10].mxu0 %v712_v48  ;;  %v1349_v2 = vpack.c.bf16 %v860_v1, %v859_v0 }
 0x291   : > { %v1442_v49 = vpop.eup %1441  ;;  %1271 = vmatprep.mubr.f32.mxu0 %v713_v44  ;;  %1342 = vmatprep.subr.bf16.mxu1 %v1341_v60 }
 0x292   : > { %v1444_v51 = vpop.eup %1443  ;;  %v714_v52 = vmul.f32 %v1442_v49, %v1725_v5  ;;  %1344 = vmatpush3.bf16.msra.mxu1 %v1341_v60 }
 0x293   : > { %v715_v50 = vmul.f32 %v1444_v51, %v1727_v6  ;;  %1346 = vmatprep.subr.bf16.mxu1 %v1345_v63 }
 0x294   : > { %1272 = vmatmul.mubr.f32.gmra.mrb[12].mxu0 %v714_v52 }
 0x295   : > { %v1446_v53 = vpop.eup %1445  ;;  %1274 = vmatprep.mubr.f32.mxu0 %v715_v50 }
 0x296   : > { %v716_v54 = vmul.f32 %v1446_v53, %v1733_v13  ;;  %1348 = vmatpush3.bf16.msra.mxu1 %v1345_v63 }
 0x297   : > { %1350 = vmatprep.subr.bf16.mxu1 %v1349_v2 }
 0x298   : > { %1275 = vmatmul.mubr.f32.gmra.mrb[14].mxu0 %v716_v54 }
 0x29a   : > { %1352 = vmatpush3.bf16.msra.mxu1 %v1349_v2 }
 0x35d   : > { %v1267_v5 = vpop.f32.mrb[8].mxu0 }
 0x35e   : > { %v812_v6 = vadd.f32 %v1267_v5, %v1105_v3  ;;  %v806_v7 = vpop.f32.mrb[9].mxu0 }
 0x35f   : > { %v807_v8 = vadd.f32 %v1105_v3, %v806_v7 }
 0x361   : > { %1447 = vtanh.f32 %v807_v8 }
 0x362   : > { %1449 = vtanh.f32 %v812_v6 }
 0x363   : > { %v1270_v12 = vpop.f32.mrb[10].mxu0 }
 0x364   : > { %v822_v13 = vadd.f32 %v1270_v12, %v1105_v3  ;;  %v816_v14 = vpop.f32.mrb[11].mxu0 }
 0x365   : > { %v817_v15 = vadd.f32 %v1105_v3, %v816_v14 }
 0x367   : > { %1451 = vtanh.f32 %v817_v15  ;;  %v1273_v16 = vpop.f32.mrb[12].mxu0 }
 0x368   : > { %1453 = vtanh.f32 %v822_v13  ;;  %v832_v17 = vadd.f32 %v1273_v16, %v1105_v3  ;;  %v826_v18 = vpop.f32.mrb[13].mxu0 }
 0x369   : > { %v827_v19 = vadd.f32 %v1105_v3, %v826_v18 }
 0x36b   : > { %v1448_v20 = vpop.eup %1447  ;;  %1455 = vtanh.f32 %v827_v19  ;;  %v1276_v9 = vpop.f32.mrb[14].mxu0 }
 0x36c   : > { %v1450_v21 = vpop.eup %1449  ;;  %1457 = vtanh.f32 %v832_v17  ;;  %v842_v4 = vadd.f32 %v1276_v9, %v1105_v3  ;;  %v836_v22 = vpop.f32.mrb[15].mxu0  ;;  %1293 = vmatprep.mubr.msk.f32.mxu1 %vm868_vm8, %v1448_v20 }
 0x36d   : > { %v837_v23 = vadd.f32 %v1105_v3, %v836_v22  ;;  %1294 = vmatmul.mubr.msk.f32.vlgmr.msra.gmra.mrb[8].mxu1 %vm868_vm8, %v1450_v21 }
 0x36f   : > { %1459 = vtanh.f32 %v837_v23 }
 0x370   : > { %1461 = vtanh.f32 %v842_v4 }
 0x371   : > { %v1452_v24 = vpop.eup %1451 }
 0x372   : > { %v1454_v25 = vpop.eup %1453  ;;  %1296 = vmatprep.mubr.msk.f32.mxu1 %vm868_vm8, %v1452_v24 }
 0x373   : > { %1297 = vmatmul.mubr.msk.f32.gmra.mrb[10].mxu1 %vm868_vm8, %v1454_v25 }
 0x375   : > { %v1456_v26 = vpop.eup %1455 }
 0x376   : > { %v1458_v27 = vpop.eup %1457  ;;  %1299 = vmatprep.mubr.msk.f32.mxu1 %vm868_vm8, %v1456_v26 }
 0x377   : > { %1300 = vmatmul.mubr.msk.f32.gmra.mrb[12].mxu1 %vm868_vm8, %v1458_v27 }
 0x379   : > { %v1460_v28 = vpop.eup %1459 }
 0x37a   : > { %v1462_v29 = vpop.eup %1461  ;;  %1302 = vmatprep.mubr.msk.f32.mxu1 %vm868_vm8, %v1460_v28 }
 0x37b   : > { %1303 = vmatmul.mubr.msk.f32.gmra.mrb[14].mxu1 %vm868_vm8, %v1462_v29 }
 0x440   : > { %v1295_v31 = vpop.f32.mrb[8].mxu1 }
 0x441   : > { %v965_v32 = vadd.f32 %v1295_v31, %v1106_v30  ;;  %v959_v33 = vpop.f32.mrb[9].mxu1 }
 0x442   : > { %v960_v34 = vadd.f32 %v1106_v30, %v959_v33 }
 0x443   : > { %999 = vst [vmem:[%s272_s29 + $0x8] sm:$0xff] %v965_v32 }
 0x444   : > { %998 = vst [vmem:[%s272_s29] sm:$0xff] %v960_v34 }
 0x446   : > { %v1298_v35 = vpop.f32.mrb[10].mxu1 }
 0x447   : > { %v975_v36 = vadd.f32 %v1298_v35, %v1106_v30  ;;  %v969_v11 = vpop.f32.mrb[11].mxu1 }
 0x448   : > { %v970_v37 = vadd.f32 %v1106_v30, %v969_v11 }
 0x449   : > { %1001 = vst [vmem:[%s272_s29 + $0x18] sm:$0xff] %v975_v36 }
 0x44a   : > { %1000 = vst [vmem:[%s272_s29 + $0x10] sm:$0xff] %v970_v37  ;;  %v1301_v38 = vpop.f32.mrb[12].mxu1 }
 0x44b   : > { %v985_v39 = vadd.f32 %v1301_v38, %v1106_v30  ;;  %v979_v40 = vpop.f32.mrb[13].mxu1 }
 0x44c   : > { %v980_v10 = vadd.f32 %v1106_v30, %v979_v40 }
 0x44d   : > { %1003 = vst [vmem:[%s272_s29 + $0x28] sm:$0xff] %v985_v39 }
 0x44e   : > { %1002 = vst [vmem:[%s272_s29 + $0x20] sm:$0xff] %v980_v10  ;;  %v1304_v41 = vpop.f32.mrb[14].mxu1 }
 0x44f   : > { %v995_v42 = vadd.f32 %v1304_v41, %v1106_v30  ;;  %v989_v43 = vpop.f32.mrb[15].mxu1 }
 0x450   : > { %v990_v45 = vadd.f32 %v1106_v30, %v989_v43 }
 0x451   : > { %1005 = vst [vmem:[%s272_s29 + $0x38] sm:$0xff] %v995_v42 }
 0x452   : > { %1004 = vst [vmem:[%s272_s29 + $0x30] sm:$0xff] %v990_v45 }
 0x453   : > { %1476 = shalt.err (!%p1473_p3)
}
 0x454   : > { %s1477_s22 = scalar_lea.hbm %s1814_s17, 1024  ;;  %s1481_s9 = scalar_lea.hbm %s1868_s7, 2048 }
 0x455   : > { %p1478_p4 = scmp.ne.s32.totalorder %s1814_s17, %s1477_s22  ;;  %p1482_p9 = scmp.lt.u32.totalorder %s1814_s17, %s1868_s7 }
 0x456   : > { %p1483_p10 = scmp.lt.u32.totalorder %s1481_s9, %s1477_s22  ;;  %p1485_p12 = scmp.lt.u32.totalorder %s1477_s22, %s1814_s17 }
 0x457   : > { %p1479_p7 = pnand %p1478_p4, %p1609_p5 }
 0x458   : > { %p1484_p11 = por %p1483_p10, %p1482_p9 }
 0x459   : > { %p1480_p8 = pneg %p1479_p7 }
 0x45a   : > { %p1486_p13 = por %p1485_p12, %p1484_p11 }
 0x45c   : > { %p1487_p0 = pnand %p1486_p13, %p1480_p8 }
 0x45e   : > { %1490 = shalt.err (!%p1487_p0)
}
 0x45f   : > { %s1529_s15 = smov 128   ;;  %s1530_s16 = smov 8  }
 0x460   : > { %1353 = dma.vmem_to_hbm [thread:$0]  (%p1609_p5), %s1816_s14, 1024, %s1814_s17, %s1820_s28, %s1529_s15, %s1529_s15, %s1530_s16  }
 0x461 PF: > { %p1359_p1 = scmp.ge.s32.totalorder %s1525_s27, 2  ;;  %s1035_s18 = sand.u32 1, %s1513_s24  }
 0x462   : > { %s1036_s19 = scalar_lea.sflag [#allocation3], %s1035_s18 }
 0x463   : > { %p1356_p2 = pnand %p1359_p1, %p1613_p6 }
 0x465   : > { %1508 = dma.done.wait (!%p1356_p2), %s1036_s19, 1024  }
 0x466   : > { %1510 = vsyncadd (!%p1356_p2), %s1036_s19, 4294966272  ;;  %p17_p3 = scmp.ge.s32.totalorder %s1596_s30, 4   ;;  %s1871_s24 = smov %s1517_s25 }
 0x467   : > { %s1872_s25 = smov %s1521_s26  ;;  %s1873_s26 = smov %s1607_s10 }
 0x468   : > { %s1874_s27 = smov %s1596_s30  ;;  %19 = sbr.rel (!%p17_p3) target bundleno = 3 (0x3), region = 84 }
 0x46f   :  { %1041 = vsyncpa [#allocation3], 1 }
 0x470   :  { %1043 = vsyncpa [#allocation3 + $0x1], 1 }

// kernel: tpu_custom_call.1
= control target key start
LH: loop header
LB: loop body
LE: loop exit
PB: predicated region body
PF: predicated region fallthrough
CT: control target
= control target key end

     0   :  { %12 = vsyncpa [#allocation3], 0  ;;  %s1861_s0 = inlined_call_operand.vmem [shape: bf16[128,128], index: 0, kind: input, shape index: {}]   ;;  %s1862_s1 = inlined_call_operand.vmem [shape: f32[128,1], index: 1, kind: input, shape index: {}]   ;;  %s1863_s2 = inlined_call_operand.vmem [shape: f32[1,128], index: 2, kind: input, shape index: {}]   ;;  %s1864_s3 = inlined_call_operand.vmem [shape: f32[128,64], index: 3, kind: input, shape index: {}]   ;;  %s1865_s4 = inlined_call_operand.vmem [shape: f32[1,64], index: 4, kind: input, shape index: {}]   ;;  %s1866_s5 = inlined_call_operand.vmem [shape: f32[64,128], index: 5, kind: input, shape index: {}]   ;;  %s1867_s6 = inlined_call_operand.vmem [shape: f32[1,128], index: 6, kind: input, shape index: {}]   ;;  %s1868_s7 = inlined_call_operand.hbm [shape: f32[128,128], index: 7, kind: output, shape index: {}]  }
   0x1   :  { %14 = vsyncpa [#allocation3 + $0x1], 0  ;;  %s1571_s24 = smov 0   ;;  %s1573_s25 = smov 0  }
   0x2   :  { %s1575_s26 = smov 0   ;;  %s1577_s27 = smov 0  }
   0x3 LB: > { %s1592_s28 = sadd.s32 4294967295, %s1525_s27   ;;  %s1084_s29 = sadd.s32 4294967294, %s1525_s27   ;;  %s1525_s27 = sphi %s1577_s27, %s1874_s27   ;;  %s1521_s26 = sphi %s1575_s26, %s1873_s26   ;;  %s1517_s25 = sphi %s1573_s25, %s1872_s25   ;;  %s1513_s24 = sphi %s1571_s24, %s1871_s24  }
   0x4   : > { %s1596_s30 = sadd.s32 1, %s1525_s27   ;;  %s179_s8 = sadd.s32 1, %s1521_s26 }
   0x5   : > { %s176_s9 = ssub.s32 %s1525_s27, %s1596_s30  ;;  %p189_p0 = scmp.ne.s32.totalorder %s1521_s26, %s1517_s25 }
   0x6   : > { %p177_p1 = scmp.eq.s32.totalorder %s176_s9, 0  ;;  %p190_p2 = scmp.eq.s32.totalorder %s1592_s28, 1 }
   0x7   : > { %p195_p3 = scmp.ne.s32.totalorder %s1517_s25, %s1513_s24  ;;  %p196_p4 = scmp.eq.s32.totalorder %s1084_s29, 1 }
   0x8   : > { %s1607_s10 = scalar_select %p177_p1, %s1521_s26, %s179_s8  }
   0x9   : > { %p1609_p5 = por %p190_p2, %p189_p0  ;;  %p1613_p6 = por %p196_p4, %p195_p3 }
   0xa   : > { %p1087_p7 = scmp.ge.s32.totalorder %s1525_s27, 1  ;;  %p241_p8 = scmp.lt.s32.totalorder %s1525_s27, 3 }
   0xc   : > { %p242_p9 = pnand %p1087_p7, %p241_p8 }
   0xd   : > { %v1397_v0 = vld [vmem:[%s1861_s0] sm:$0xff] (!%p242_p9)   ;;  %s1091_s15 = sshll.u32 (!%p242_p9), %s1592_s28, 6  ;;  %v1398_v1 = vld [vmem:[%s1861_s0 + $0x8] sm:$0xff] (!%p242_p9)   ;;  %v1399_v2 = vld [vmem:[%s1861_s0 + $0x10] sm:$0xff] (!%p242_p9)   ;;  %s1089_s21 = sshll.u32 (!%p242_p9), %s1592_s28, 3  ;;  %v1527_v12 = vmov (!%p242_p9), 0   ;;  %v608_v54 = vlaneseq (!%p242_p9) }
   0xe   : > { %245 = sbr.rel (%p242_p9) target bundleno = 1121 (0x461), region = 48  ;;  %s298_s18 = sshra.s32 (!%p242_p9), %s1091_s15, 3  ;;  %1185 = vmatprep.subr.bf16.mxu0 (!%p242_p9), %v1397_v0  ;;  %1209 = vmatprep.subr.bf16.mxu1 (!%p242_p9), %v1397_v0  ;;  %v1400_v3 = vld [vmem:[%s1861_s0 + $0x18] sm:$0xff] (!%p242_p9)   ;;  %v1401_v5 = vld [vmem:[%s1861_s0 + $0x20] sm:$0xff] (!%p242_p9)   ;;  %v1402_v6 = vld [vmem:[%s1861_s0 + $0x28] sm:$0xff] (!%p242_p9)  }
   0xf   : > { %s1092_s19 = sshll.u32 (!%p242_p9), %s298_s18, 2  ;;  %1186 = vmatpush3.bf16.msra.mxu0 (!%p242_p9), %v1397_v0  ;;  %1210 = vmatpush3.bf16.msra.mxu1 (!%p242_p9), %v1397_v0  ;;  %v1403_v7 = vld [vmem:[%s1861_s0 + $0x30] sm:$0xff] (!%p242_p9)   ;;  %v1404_v8 = vld [vmem:[%s1861_s0 + $0x38] sm:$0xff] (!%p242_p9)   ;;  %p274_p10 = scmp.lt.s32.totalorder (!%p242_p9), %s1089_s21, 15  ;;  %v717_v41 = vld [vmem:[%s1864_s3] sm:$0xff] (!%p242_p9)  ;;  %v609_v56 = vshrl.u32 (!%p242_p9), %v608_v54, 7 }
  0x10   : > { %1187 = vmatprep.subr.bf16.mxu0 (!%p242_p9), %v1398_v1  ;;  %1211 = vmatprep.subr.bf16.mxu1 (!%p242_p9), %v1398_v1  ;;  %s1632_s29 = scalar_lea.vmem (!%p242_p9), %s1861_s0, %s1092_s19  ;;  %v718_v42 = vld [vmem:[%s1864_s3 + $0x8] sm:$0xff] (!%p242_p9)  ;;  %v719_v43 = vld [vmem:[%s1864_s3 + $0x10] sm:$0xff] (!%p242_p9)  ;;  %v720_v45 = vld [vmem:[%s1864_s3 + $0x18] sm:$0xff] (!%p242_p9)  ;;  %s1120_s13 = sshll.u32 (!%p242_p9), %s1592_s28, 10 }
  0x11   : > { %v1638_v4 = vld [vmem:[%s1632_s29] sm:$0xff] (!%p242_p9)   ;;  %v1654_v9 = vld [vmem:[%s1632_s29 + $0x8] sm:$0xff] (!%p242_p9)   ;;  %v1657_v10 = vld [vmem:[%s1632_s29 + $0x10] sm:$0xff] (!%p242_p9)   ;;  %1395 = vset.pattern.permute.xlu0 (!%p242_p9), %v1527_v12  ;;  %1396 = vset.pattern.permute.xlu1 (!%p242_p9), %v1527_v12  ;;  %v1305_v44 = vpack.c.bf16 (!%p242_p9), %v718_v42, %v717_v41  ;;  %v1309_v46 = vpack.c.bf16 (!%p242_p9), %v720_v45, %v719_v43  ;;  %v610_v59 = vsub.s32 (!%p242_p9), 0, %v609_v56  ;;  %s1814_s17 = scalar_lea.hbm (!%p242_p9), %s1868_s7, %s1120_s13  ;;  %s1528_s19 = smov (!%p242_p9), [#allocation2]  }
  0x12   : > { %1201 = vmatprep.mubr.bf16.mxu0 (!%p242_p9), %v1638_v4  ;;  %v1662_v11 = vld [vmem:[%s1632_s29 + $0x18] sm:$0xff] (!%p242_p9)   ;;  %v721_v47 = vld [vmem:[%s1864_s3 + $0x20] sm:$0xff] (!%p242_p9)  ;;  %v722_v48 = vld [vmem:[%s1864_s3 + $0x28] sm:$0xff] (!%p242_p9)  ;;  %v518_v58 = vunpack.c.l.bf16 (!%p242_p9), %v1654_v9  ;;  %v516_v61 = vunpack.c.l.bf16 (!%p242_p9), %v1638_v4  ;;  %v519_v63 = vunpack.c.h.bf16 (!%p242_p9), %v1654_v9  ;;  %v517_v0 = vunpack.c.h.bf16 (!%p242_p9), %v1638_v4  ;;  %s1467_s20 = sshll.u32 (!%p242_p9), %s1528_s19, 4  ;;  %s1468_s20 = int_to_ptr.vmem [resolvable:$false] %s1467_s20 }
  0x13   : > { %1188 = vmatpush3.bf16.msra.mxu0 (!%p242_p9), %v1398_v1  ;;  %1212 = vmatpush3.bf16.msra.mxu1 (!%p242_p9), %v1398_v1  ;;  %v1313_v49 = vpack.c.bf16 (!%p242_p9), %v722_v48, %v721_v47  ;;  %v723_v50 = vld [vmem:[%s1864_s3 + $0x30] sm:$0xff] (!%p242_p9)  ;;  %v724_v51 = vld [vmem:[%s1864_s3 + $0x38] sm:$0xff] (!%p242_p9)  ;;  %v604_v53 = vld [vmem:[%s1863_s2] sm:$0x1] (!%p242_p9) }
  0x14   : > { %1189 = vmatprep.subr.bf16.mxu0 (!%p242_p9), %v1399_v2  ;;  %1213 = vmatprep.subr.bf16.mxu1 (!%p242_p9), %v1399_v2  ;;  %v1317_v52 = vpack.c.bf16 (!%p242_p9), %v724_v51, %v723_v50 }
  0x15   : > { %s1876_s21 = smov (!%p274_p10, %s1089_s21), 15 }
  0x16   : > { %s1090_s22 = sshll.u32 %s1876_s21, 3  ;;  %s1469_s21 = scalar_lea.vmem %s1468_s20, 2048 }
  0x17   : > { %1190 = vmatpush3.bf16.msra.mxu0 %v1399_v2  ;;  %1214 = vmatpush3.bf16.msra.mxu1 %v1399_v2  ;;  %s277_s9 = scalar_lea.vmem %s1862_s1, %s1090_s22  ;;  %s270_s22 = sand.u32 1, %s1517_s25  }
  0x18   : > { %1191 = vmatprep.subr.bf16.mxu0 %v1400_v3  ;;  %1215 = vmatprep.subr.bf16.mxu1 %v1400_v3  ;;  %v532_v13 = vld [vmem:[%s277_s9] sm:$0xff]  ;;  %v534_v14 = vld [vmem:[%s277_s9 + $0x10] sm:$0xff]  ;;  %v533_v15 = vld [vmem:[%s277_s9 + $0x8] sm:$0xff]  ;;  %s1088_s23 = sshll.u32 %s270_s22, 6  ;;  %s1820_s28 = scalar_lea.sflag [#allocation3], %s270_s22 }
  0x19   : > { %1413 = vrcp.f32 %v532_v13  ;;  %v535_v16 = vld [vmem:[%s277_s9 + $0x18] sm:$0xff]  ;;  %v536_v17 = vld [vmem:[%s277_s9 + $0x20] sm:$0xff]  ;;  %v537_v18 = vld [vmem:[%s277_s9 + $0x28] sm:$0xff]  ;;  %s272_s29 = scalar_lea.vmem [#allocation2], %s1088_s23 }
  0x1a   : > { %1415 = vrcp.f32 %v534_v14  ;;  %v538_v19 = vld [vmem:[%s277_s9 + $0x30] sm:$0xff]  ;;  %v539_v20 = vld [vmem:[%s277_s9 + $0x38] sm:$0xff]  ;;  %s1020_s14 = sshll.u32 %s272_s29, 4  ;;  %s1816_s14 = int_to_ptr.vmem [resolvable:$true] %s1020_s14 }
  0x1b   : > { %1192 = vmatpush3.bf16.msra.mxu0 %v1400_v3  ;;  %1216 = vmatpush3.bf16.msra.mxu1 %v1400_v3  ;;  %1417 = vrcp.f32 %v533_v15  ;;  %s1463_s18 = scalar_lea.vmem %s1816_s14, 1024  ;;  %p1470_p0 = scmp.lt.s32.totalorder %s1816_s14, %s1468_s20 }
  0x1c   : > { %1193 = vmatprep.subr.bf16.mxu0 %v1401_v5  ;;  %1217 = vmatprep.subr.bf16.mxu1 %v1401_v5  ;;  %1419 = vrcp.f32 %v535_v16  ;;  %p1464_p11 = scmp.ne.s32.totalorder %s1816_s14, %s1463_s18  ;;  %p1471_p1 = scmp.lt.s32.totalorder %s1469_s21, %s1463_s18 }
  0x1d   : > { %1421 = vrcp.f32 %v536_v17 }
  0x1e   : > { %1423 = vrcp.f32 %v537_v18  ;;  %p1465_p12 = pnand %p1464_p11, %p1609_p5  ;;  %p1472_p2 = por %p1471_p1, %p1470_p0 }
  0x1f   : > { %1194 = vmatpush3.bf16.msra.mxu0 %v1401_v5  ;;  %1218 = vmatpush3.bf16.msra.mxu1 %v1401_v5  ;;  %1425 = vrcp.f32 %v538_v19 }
  0x20   : > { %1195 = vmatprep.subr.bf16.mxu0 %v1402_v6  ;;  %1219 = vmatprep.subr.bf16.mxu1 %v1402_v6  ;;  %1427 = vrcp.f32 %v539_v20  ;;  %v522_v20 = vunpack.c.l.bf16 %v1662_v11  ;;  %p1466_p13 = pneg %p1465_p12 }
  0x21   : > { %1429 = vrcp.f32 %v604_v53 }
  0x22   : > { %p1473_p3 = pnand %p1472_p2, %p1466_p13 }
  0x23   : > { %1196 = vmatpush3.bf16.msra.mxu0 %v1402_v6  ;;  %1220 = vmatpush3.bf16.msra.mxu1 %v1402_v6  ;;  %v1414_v21 = vpop.eup %1413 }
  0x24   : > { %1197 = vmatprep.subr.bf16.mxu0 %v1403_v7  ;;  %1221 = vmatprep.subr.bf16.mxu1 %v1403_v7  ;;  %v1416_v22 = vpop.eup %1415 }
  0x25   : > { %558 = vperm.xlu0 %1395, %v1414_v21   ;;  %v1418_v23 = vpop.eup %1417  ;;  %568 = vperm.xlu1 %1396, %v1416_v22   ;;  %v520_v22 = vunpack.c.l.bf16 %v1657_v10 }
  0x26   : > { %v1420_v24 = vpop.eup %1419 }
  0x27   : > { %1198 = vmatpush3.bf16.msra.mxu0 %v1403_v7  ;;  %1222 = vmatpush3.bf16.msra.mxu1 %v1403_v7  ;;  %v1422_v25 = vpop.eup %1421 }
  0x28   : > { %1199 = vmatprep.subr.bf16.mxu0 %v1404_v8  ;;  %1223 = vmatprep.subr.bf16.mxu1 %v1404_v8  ;;  %v1424_v26 = vpop.eup %1423 }
  0x29   : > { %563 = vperm.xlu0 %1395, %v1418_v23   ;;  %573 = vperm.xlu1 %1396, %v1420_v24   ;;  %v1426_v27 = vpop.eup %1425  ;;  %v523_v24 = vunpack.c.h.bf16 %v1662_v11 }
  0x2a   : > { %v1428_v28 = vpop.eup %1427 }
  0x2b   : > { %1200 = vmatpush3.bf16.msra.mxu0 %v1404_v8  ;;  %1224 = vmatpush3.bf16.msra.mxu1 %v1404_v8  ;;  %v1430_v60 = vpop.eup %1429 }
  0x2c   : > { %1306 = vmatprep.subr.bf16.mxu0 %v1305_v44  ;;  %v611_v5 = vrot.slane %v1430_v60, %v610_v59 }
  0x2d   : > { %578 = vperm.xlu0 %1395, %v1422_v25   ;;  %583 = vperm.xlu1 %1396, %v1424_v26  }
  0x2e   : > { %1202 = vmatmul.mubr.bf16.vlgmr.msra.gmra.mrb[0].mxu0 %v1654_v9 }
  0x2f   : > { %1205 = vmatprep.mubr.bf16.mxu0 %v1657_v10  ;;  %1308 = vmatpush3.bf16.msra.mxu0 %v1305_v44 }
  0x30   : > { %1310 = vmatprep.subr.bf16.mxu0 %v1309_v46 }
  0x31   : > { %588 = vperm.xlu0 %1395, %v1426_v27   ;;  %593 = vperm.xlu1 %1396, %v1428_v28   ;;  %v521_v27 = vunpack.c.h.bf16 %v1657_v10 }
  0x33   : > { %1312 = vmatpush3.bf16.msra.mxu0 %v1309_v46 }
  0x34   : > { %1314 = vmatprep.subr.bf16.mxu0 %v1313_v49 }
  0x36   : > { %1206 = vmatmul.mubr.bf16.gmra.mrb[4].mxu0 %v1662_v11 }
  0x37   : > { %1316 = vmatpush3.bf16.msra.mxu0 %v1313_v49 }
  0x38   : > { %1318 = vmatprep.subr.bf16.mxu0 %v1317_v52 }
  0x3b   : > { %1320 = vmatpush3.bf16.msra.mxu0 %v1317_v52 }
  0xa4   : > { %v559_v55 = vpop.permute.xlu0 %558  ;;  %v569_v57 = vpop.permute.xlu1 %568 }
  0xa8   : > { %v564_v62 = vpop.permute.xlu0 %563  ;;  %v574_v1 = vpop.permute.xlu1 %573 }
  0xac   : > { %v579_v15 = vpop.permute.xlu0 %578  ;;  %v584_v4 = vpop.permute.xlu1 %583 }
 0x101   : > { %v1203_v29 = vpop.f32.mrb[0].mxu0 }
 0x102   : > { %v416_v30 = vpop.f32.mrb[1].mxu0 }
 0x103   : > { %v1204_v31 = vpop.f32.mrb[2].mxu0 }
 0x104   : > { %v448_v32 = vpack.c.bf16 %v1204_v31, %v1203_v29  ;;  %v419_v33 = vpop.f32.mrb[3].mxu0 }
 0x105   : > { %v447_v34 = vpack.c.bf16 %v419_v33, %v416_v30 }
 0x107   : > { %1225 = vmatprep.mubr.bf16.mxu1 %v447_v34 }
 0x108   : > { %1226 = vmatmul.mubr.bf16.vlgmr.msra.gmra.mrb[0].mxu1 %v448_v32  ;;  %v589_v32 = vpop.permute.xlu0 %588 }
 0x109   : > { %v1207_v35 = vpop.f32.mrb[4].mxu0 }
 0x10a   : > { %v432_v36 = vpop.f32.mrb[5].mxu0 }
 0x10b   : > { %v1208_v37 = vpop.f32.mrb[6].mxu0 }
 0x10c   : > { %v450_v38 = vpack.c.bf16 %v1208_v37, %v1207_v35  ;;  %v435_v39 = vpop.f32.mrb[7].mxu0 }
 0x10d   : > { %v449_v40 = vpack.c.bf16 %v435_v39, %v432_v36 }
 0x10f   : > { %1229 = vmatprep.mubr.bf16.mxu1 %v449_v40  ;;  %v594_v40 = vpop.permute.xlu1 %593 }
 0x110   : > { %1230 = vmatmul.mubr.bf16.gmra.mrb[4].mxu1 %v450_v38 }
 0x1db   : > { %v1227_v2 = vpop.f32.mrb[0].mxu1 }
 0x1dc   : > { %v526_v3 = vmul.f32 %v1227_v2, %v518_v58  ;;  %v485_v6 = vpop.f32.mrb[1].mxu1 }
 0x1dd   : > { %v524_v7 = vmul.f32 %v516_v61, %v485_v6  ;;  %v1228_v8 = vpop.f32.mrb[2].mxu1 }
 0x1de   : > { %v598_v12 = vmul.f32 %v569_v57, %v526_v3  ;;  %v527_v13 = vmul.f32 %v1228_v8, %v519_v63  ;;  %v488_v14 = vpop.f32.mrb[3].mxu1 }
 0x1df   : > { %v596_v16 = vmul.f32 %v559_v55, %v524_v7  ;;  %v525_v17 = vmul.f32 %v517_v0, %v488_v14 }
 0x1e0   : > { %v615_v18 = vmul.f32 %v611_v5, %v598_v12  ;;  %v599_v19 = vmul.f32 %v574_v1, %v527_v13 }
 0x1e1   : > { %v613_v9 = vmul.f32 %v611_v5, %v596_v16  ;;  %v597_v21 = vmul.f32 %v564_v62, %v525_v17  ;;  %v726_v16 = vld [vmem:[%s1864_s3 + $0x48] sm:$0xff] }
 0x1e2   : > { %v616_v23 = vmul.f32 %v611_v5, %v599_v19  ;;  %vm623_vm0 = vcmp.ne.f32.partialorder %v615_v18, %v615_v18  ;;  %v728_v19 = vld [vmem:[%s1864_s3 + $0x58] sm:$0xff] }
 0x1e3   : > { %v614_v25 = vmul.f32 %v611_v5, %v597_v21  ;;  %v1231_v26 = vpop.f32.mrb[4].mxu1  ;;  %vm621_vm1 = vcmp.ne.f32.partialorder %v613_v9, %v613_v9  ;;  %v631_v28 = vsel %vm623_vm0, 0.0, %v615_v18  ;;  %v727_v18 = vld [vmem:[%s1864_s3 + $0x50] sm:$0xff]  ;;  %v730_v21 = vld [vmem:[%s1864_s3 + $0x68] sm:$0xff] }
 0x1e4   : > { %v530_v29 = vmul.f32 %v1231_v26, %v522_v20  ;;  %v501_v30 = vpop.f32.mrb[5].mxu1  ;;  %v629_v31 = vsel %vm621_vm1, 0.0, %v613_v9  ;;  %vm639_vm2 = vcmp.eq.f32.partialorder %v631_v28, inf  ;;  %vm624_vm3 = vcmp.ne.f32.partialorder %v616_v23, %v616_v23  ;;  %v729_v9 = vld [vmem:[%s1864_s3 + $0x60] sm:$0xff] }
 0x1e5   : > { %v528_v33 = vmul.f32 %v520_v22, %v501_v30  ;;  %v1232_v34 = vpop.f32.mrb[6].mxu1  ;;  %vm637_vm4 = vcmp.eq.f32.partialorder %v629_v31, inf  ;;  %vm622_vm5 = vcmp.ne.f32.partialorder %v614_v25, %v614_v25  ;;  %v647_v35 = vsel %vm639_vm2, 3.4028235e+38, %v631_v28  ;;  %v731_v22 = vld [vmem:[%s1864_s3 + $0x70] sm:$0xff] }
 0x1e6   : > { %v602_v36 = vmul.f32 %v589_v32, %v530_v29  ;;  %v531_v11 = vmul.f32 %v1232_v34, %v523_v24  ;;  %v504_v37 = vpop.f32.mrb[7].mxu1  ;;  %v645_v38 = vsel %vm637_vm4, 3.4028235e+38, %v629_v31  ;;  %v630_v39 = vsel %vm622_vm5, 0.0, %v614_v25 }
 0x1e7   : > { %v600_v10 = vmul.f32 %v579_v15, %v528_v33  ;;  %v529_v41 = vmul.f32 %v521_v27, %v504_v37  ;;  %vm653_vm6 = vcmp.eq.f32.partialorder %v645_v38, -inf  ;;  %vm638_vm7 = vcmp.eq.f32.partialorder %v630_v39, inf  ;;  %v725_v15 = vld [vmem:[%s1864_s3 + $0x40] sm:$0xff] }
 0x1e8   : > { %v619_v42 = vmul.f32 %v611_v5, %v602_v36  ;;  %v603_v43 = vmul.f32 %v594_v40, %v531_v11  ;;  %v1704_v44 = vsel %vm653_vm6, -3.4028235e+38, %v645_v38  ;;  %v646_v45 = vsel %vm638_vm7, 3.4028235e+38, %v630_v39 }
 0x1e9   : > { %v617_v46 = vmul.f32 %v611_v5, %v600_v10  ;;  %v601_v47 = vmul.f32 %v584_v4, %v529_v41  ;;  %v669_v48 = vmul.f32 %v1704_v44, %v1704_v44  ;;  %vm654_vm8 = vcmp.eq.f32.partialorder %v646_v45, -inf }
 0x1ea   : > { %v620_v49 = vmul.f32 %v611_v5, %v603_v43  ;;  %v1708_v50 = vsel %vm654_vm8, -3.4028235e+38, %v646_v45  ;;  %vm655_vm9 = vcmp.eq.f32.partialorder %v647_v35, -inf  ;;  %v632_v51 = vsel %vm624_vm3, 0.0, %v616_v23  ;;  %v732_v23 = vld [vmem:[%s1864_s3 + $0x78] sm:$0xff] }
 0x1eb   : > { %v618_v52 = vmul.f32 %v611_v5, %v601_v47  ;;  %677 = vadd.xlane.f32.xlu0 %v669_v48  ;;  %v670_v53 = vmul.f32 %v1708_v50, %v1708_v50  ;;  %v1713_v54 = vsel %vm655_vm9, -3.4028235e+38, %v647_v35  ;;  %vm640_vm10 = vcmp.eq.f32.partialorder %v632_v51, inf }
 0x1ec   : > { %v671_v55 = vmul.f32 %v1713_v54, %v1713_v54  ;;  %v648_v56 = vsel %vm640_vm10, 3.4028235e+38, %v632_v51  ;;  %vm625_vm11 = vcmp.ne.f32.partialorder %v617_v46, %v617_v46  ;;  %vm627_vm12 = vcmp.ne.f32.partialorder %v619_v42, %v619_v42 }
 0x1ed   : > { %679 = vadd.xlane.f32.xlu1 %v670_v53  ;;  %vm656_vm13 = vcmp.eq.f32.partialorder %v648_v56, -inf  ;;  %v633_v57 = vsel %vm625_vm11, 0.0, %v617_v46  ;;  %vm626_vm14 = vcmp.ne.f32.partialorder %v618_v52, %v618_v52  ;;  %v635_v58 = vsel %vm627_vm12, 0.0, %v619_v42 }
 0x1ee   : > { %v1717_v59 = vsel %vm656_vm13, -3.4028235e+38, %v648_v56  ;;  %vm641_vm15 = vcmp.eq.f32.partialorder %v633_v57, inf  ;;  %v634_v60 = vsel %vm626_vm14, 0.0, %v618_v52  ;;  %vm643_vm0 = vcmp.eq.f32.partialorder %v635_v58, inf  ;;  %v854_v56 = vld [vmem:[%s1866_s5 + $0x8] sm:$0xff] }
 0x1ef   : > { %681 = vadd.xlane.f32.xlu0 %v671_v55  ;;  %v649_v61 = vsel %vm641_vm15, 3.4028235e+38, %v633_v57  ;;  %vm642_vm1 = vcmp.eq.f32.partialorder %v634_v60, inf  ;;  %v651_v62 = vsel %vm643_vm0, 3.4028235e+38, %v635_v58  ;;  %vm628_vm4 = vcmp.ne.f32.partialorder %v620_v49, %v620_v49  ;;  %v853_v55 = vld [vmem:[%s1866_s5] sm:$0xff] }
 0x1f0   : > { %vm657_vm2 = vcmp.eq.f32.partialorder %v649_v61, -inf  ;;  %v650_v63 = vsel %vm642_vm1, 3.4028235e+38, %v634_v60  ;;  %vm659_vm3 = vcmp.eq.f32.partialorder %v651_v62, -inf  ;;  %v672_v0 = vmul.f32 %v1717_v59, %v1717_v59  ;;  %v855_v58 = vld [vmem:[%s1866_s5 + $0x10] sm:$0xff] }
 0x1f1   : > { %v1721_v1 = vsel %vm657_vm2, -3.4028235e+38, %v649_v61  ;;  %vm658_vm5 = vcmp.eq.f32.partialorder %v650_v63, -inf  ;;  %v636_v2 = vsel %vm628_vm4, 0.0, %v620_v49  ;;  %v1727_v6 = vsel %vm659_vm3, -3.4028235e+38, %v651_v62 }
 0x1f2   : > { %v673_v3 = vmul.f32 %v1721_v1, %v1721_v1  ;;  %v1725_v5 = vsel %vm658_vm5, -3.4028235e+38, %v650_v63  ;;  %vm644_vm6 = vcmp.eq.f32.partialorder %v636_v2, inf  ;;  %v675_v12 = vmul.f32 %v1727_v6, %v1727_v6  ;;  %v857_v61 = vld [vmem:[%s1866_s5 + $0x20] sm:$0xff]  ;;  %v858_v62 = vld [vmem:[%s1866_s5 + $0x28] sm:$0xff] }
 0x1f3   : > { %683 = vadd.xlane.f32.xlu0 %v672_v0  ;;  %v652_v7 = vsel %vm644_vm6, 3.4028235e+38, %v636_v2  ;;  %v674_v8 = vmul.f32 %v1725_v5, %v1725_v5  ;;  %v1321_v17 = vpack.c.bf16 %v726_v16, %v725_v15  ;;  %v1325_v20 = vpack.c.bf16 %v728_v19, %v727_v18  ;;  %v859_v0 = vld [vmem:[%s1866_s5 + $0x30] sm:$0xff] }
 0x1f4   : > { %685 = vadd.xlane.f32.xlu1 %v673_v3  ;;  %vm660_vm7 = vcmp.eq.f32.partialorder %v652_v7, -inf  ;;  %v1329_v4 = vpack.c.bf16 %v730_v21, %v729_v9  ;;  %v1333_v24 = vpack.c.bf16 %v732_v23, %v731_v22  ;;  %v1337_v57 = vpack.c.bf16 %v854_v56, %v853_v55  ;;  %v1105_v3 = vld [vmem:[%s1865_s4] ss:$0 sm:$0xff] }
 0x1f5   : > { %v1733_v13 = vsel %vm660_vm7, -3.4028235e+38, %v652_v7  ;;  %1322 = vmatprep.subr.bf16.mxu0 %v1321_v17  ;;  %v1345_v63 = vpack.c.bf16 %v858_v62, %v857_v61  ;;  %vm868_vm8 = vcmask 523264  }
 0x1f6   : > { %v676_v14 = vmul.f32 %v1733_v13, %v1733_v13  ;;  %1324 = vmatpush3.bf16.msra.mxu0 %v1321_v17  ;;  %1338 = vmatprep.subr.bf16.mxu1 %v1337_v57 }
 0x1f7   : > { %687 = vadd.xlane.f32.xlu0 %v674_v8  ;;  %1326 = vmatprep.subr.bf16.mxu0 %v1325_v20 }
 0x1f8   : > { %689 = vadd.xlane.f32.xlu1 %v675_v12  ;;  %1340 = vmatpush3.bf16.msra.mxu1 %v1337_v57 }
 0x1fa   : > { %1328 = vmatpush3.bf16.msra.mxu0 %v1325_v20 }
 0x1fb   : > { %691 = vadd.xlane.f32.xlu0 %v676_v14  ;;  %1330 = vmatprep.subr.bf16.mxu0 %v1329_v4 }
 0x1fe   : > { %1332 = vmatpush3.bf16.msra.mxu0 %v1329_v4 }
 0x1ff   : > { %1334 = vmatprep.subr.bf16.mxu0 %v1333_v24 }
 0x202   : > { %1336 = vmatpush3.bf16.msra.mxu0 %v1333_v24 }
 0x278   : > { %v678_v25 = vpop.xlane.xlu0 %677 }
 0x279   : > { %v693_v26 = vmax.f32 %v678_v25, 1e-24 }
 0x27a   : > { %v680_v27 = vpop.xlane.xlu1 %679 }
 0x27b   : > { %1431 = vrsqrt.f32 %v693_v26  ;;  %v694_v28 = vmax.f32 %v680_v27, 1e-24 }
 0x27c   : > { %v682_v29 = vpop.xlane.xlu0 %681 }
 0x27d   : > { %1433 = vrsqrt.f32 %v694_v28  ;;  %v695_v30 = vmax.f32 %v682_v29, 1e-24 }
 0x27f   : > { %1435 = vrsqrt.f32 %v695_v30  ;;  %v1106_v30 = vld [vmem:[%s1867_s6] ss:$0 sm:$0xff] }
 0x280   : > { %v684_v31 = vpop.xlane.xlu0 %683 }
 0x281   : > { %v686_v32 = vpop.xlane.xlu1 %685  ;;  %v696_v33 = vmax.f32 %v684_v31, 1e-24 }
 0x282   : > { %v697_v34 = vmax.f32 %v686_v32, 1e-24 }
 0x283   : > { %1437 = vrsqrt.f32 %v696_v33 }
 0x284   : > { %1439 = vrsqrt.f32 %v697_v34  ;;  %v688_v35 = vpop.xlane.xlu0 %687 }
 0x285   : > { %v1432_v36 = vpop.eup %1431  ;;  %v690_v11 = vpop.xlane.xlu1 %689  ;;  %v698_v37 = vmax.f32 %v688_v35, 1e-24 }
 0x286   : > { %v699_v38 = vmax.f32 %v690_v11, 1e-24  ;;  %v709_v39 = vmul.f32 %v1432_v36, %v1704_v44 }
 0x287   : > { %v1434_v40 = vpop.eup %1433  ;;  %1441 = vrsqrt.f32 %v698_v37 }
 0x288   : > { %1443 = vrsqrt.f32 %v699_v38  ;;  %1265 = vmatprep.mubr.f32.mxu0 %v709_v39  ;;  %v692_v10 = vpop.xlane.xlu0 %691  ;;  %v710_v41 = vmul.f32 %v1434_v40, %v1708_v50 }
 0x289   : > { %v1436_v42 = vpop.eup %1435  ;;  %v700_v43 = vmax.f32 %v692_v10, 1e-24 }
 0x28a   : > { %1266 = vmatmul.mubr.f32.vlgmr.msra.gmra.mrb[8].mxu0 %v710_v41  ;;  %v711_v45 = vmul.f32 %v1436_v42, %v1713_v54 }
 0x28b   : > { %1445 = vrsqrt.f32 %v700_v43 }
 0x28c   : > { %1268 = vmatprep.mubr.f32.mxu0 %v711_v45 }
 0x28d   : > { %v1438_v46 = vpop.eup %1437 }
 0x28e   : > { %v1440_v47 = vpop.eup %1439  ;;  %v712_v48 = vmul.f32 %v1438_v46, %v1717_v59  ;;  %v856_v59 = vld [vmem:[%s1866_s5 + $0x18] sm:$0xff] }
 0x28f   : > { %v713_v44 = vmul.f32 %v1440_v47, %v1721_v1  ;;  %v1341_v60 = vpack.c.bf16 %v856_v59, %v855_v58  ;;  %v860_v1 = vld [vmem:[%s1866_s5 + $0x38] sm:$0xff] }
 0x290   : > { %1269 = vmatmul.mubr.f32.gmra.mrb[10].mxu0 %v712_v48  ;;  %v1349_v2 = vpack.c.bf16 %v860_v1, %v859_v0 }
 0x291   : > { %v1442_v49 = vpop.eup %1441  ;;  %1271 = vmatprep.mubr.f32.mxu0 %v713_v44  ;;  %1342 = vmatprep.subr.bf16.mxu1 %v1341_v60 }
 0x292   : > { %v1444_v51 = vpop.eup %1443  ;;  %v714_v52 = vmul.f32 %v1442_v49, %v1725_v5  ;;  %1344 = vmatpush3.bf16.msra.mxu1 %v1341_v60 }
 0x293   : > { %v715_v50 = vmul.f32 %v1444_v51, %v1727_v6  ;;  %1346 = vmatprep.subr.bf16.mxu1 %v1345_v63 }
 0x294   : > { %1272 = vmatmul.mubr.f32.gmra.mrb[12].mxu0 %v714_v52 }
 0x295   : > { %v1446_v53 = vpop.eup %1445  ;;  %1274 = vmatprep.mubr.f32.mxu0 %v715_v50 }
 0x296   : > { %v716_v54 = vmul.f32 %v1446_v53, %v1733_v13  ;;  %1348 = vmatpush3.bf16.msra.mxu1 %v1345_v63 }
 0x297   : > { %1350 = vmatprep.subr.bf16.mxu1 %v1349_v2 }
 0x298   : > { %1275 = vmatmul.mubr.f32.gmra.mrb[14].mxu0 %v716_v54 }
 0x29a   : > { %1352 = vmatpush3.bf16.msra.mxu1 %v1349_v2 }
 0x35d   : > { %v1267_v5 = vpop.f32.mrb[8].mxu0 }
 0x35e   : > { %v812_v6 = vadd.f32 %v1267_v5, %v1105_v3  ;;  %v806_v7 = vpop.f32.mrb[9].mxu0 }
 0x35f   : > { %v807_v8 = vadd.f32 %v1105_v3, %v806_v7 }
 0x361   : > { %1447 = vtanh.f32 %v807_v8 }
 0x362   : > { %1449 = vtanh.f32 %v812_v6 }
 0x363   : > { %v1270_v12 = vpop.f32.mrb[10].mxu0 }
 0x364   : > { %v822_v13 = vadd.f32 %v1270_v12, %v1105_v3  ;;  %v816_v14 = vpop.f32.mrb[11].mxu0 }
 0x365   : > { %v817_v15 = vadd.f32 %v1105_v3, %v816_v14 }
 0x367   : > { %1451 = vtanh.f32 %v817_v15  ;;  %v1273_v16 = vpop.f32.mrb[12].mxu0 }
 0x368   : > { %1453 = vtanh.f32 %v822_v13  ;;  %v832_v17 = vadd.f32 %v1273_v16, %v1105_v3  ;;  %v826_v18 = vpop.f32.mrb[13].mxu0 }
 0x369   : > { %v827_v19 = vadd.f32 %v1105_v3, %v826_v18 }
 0x36b   : > { %v1448_v20 = vpop.eup %1447  ;;  %1455 = vtanh.f32 %v827_v19  ;;  %v1276_v9 = vpop.f32.mrb[14].mxu0 }
 0x36c   : > { %v1450_v21 = vpop.eup %1449  ;;  %1457 = vtanh.f32 %v832_v17  ;;  %v842_v4 = vadd.f32 %v1276_v9, %v1105_v3  ;;  %v836_v22 = vpop.f32.mrb[15].mxu0  ;;  %1293 = vmatprep.mubr.msk.f32.mxu1 %vm868_vm8, %v1448_v20 }
 0x36d   : > { %v837_v23 = vadd.f32 %v1105_v3, %v836_v22  ;;  %1294 = vmatmul.mubr.msk.f32.vlgmr.msra.gmra.mrb[8].mxu1 %vm868_vm8, %v1450_v21 }
 0x36f   : > { %1459 = vtanh.f32 %v837_v23 }
 0x370   : > { %1461 = vtanh.f32 %v842_v4 }
 0x371   : > { %v1452_v24 = vpop.eup %1451 }
 0x372   : > { %v1454_v25 = vpop.eup %1453  ;;  %1296 = vmatprep.mubr.msk.f32.mxu1 %vm868_vm8, %v1452_v24 }
 0x373   : > { %1297 = vmatmul.mubr.msk.f32.gmra.mrb[10].mxu1 %vm868_vm8, %v1454_v25 }
 0x375   : > { %v1456_v26 = vpop.eup %1455 }
 0x376   : > { %v1458_v27 = vpop.eup %1457  ;;  %1299 = vmatprep.mubr.msk.f32.mxu1 %vm868_vm8, %v1456_v26 }
 0x377   : > { %1300 = vmatmul.mubr.msk.f32.gmra.mrb[12].mxu1 %vm868_vm8, %v1458_v27 }
 0x379   : > { %v1460_v28 = vpop.eup %1459 }
 0x37a   : > { %v1462_v29 = vpop.eup %1461  ;;  %1302 = vmatprep.mubr.msk.f32.mxu1 %vm868_vm8, %v1460_v28 }
 0x37b   : > { %1303 = vmatmul.mubr.msk.f32.gmra.mrb[14].mxu1 %vm868_vm8, %v1462_v29 }
 0x440   : > { %v1295_v31 = vpop.f32.mrb[8].mxu1 }
 0x441   : > { %v965_v32 = vadd.f32 %v1295_v31, %v1106_v30  ;;  %v959_v33 = vpop.f32.mrb[9].mxu1 }
 0x442   : > { %v960_v34 = vadd.f32 %v1106_v30, %v959_v33 }
 0x443   : > { %999 = vst [vmem:[%s272_s29 + $0x8] sm:$0xff] %v965_v32 }
 0x444   : > { %998 = vst [vmem:[%s272_s29] sm:$0xff] %v960_v34 }
 0x446   : > { %v1298_v35 = vpop.f32.mrb[10].mxu1 }
 0x447   : > { %v975_v36 = vadd.f32 %v1298_v35, %v1106_v30  ;;  %v969_v11 = vpop.f32.mrb[11].mxu1 }
 0x448   : > { %v970_v37 = vadd.f32 %v1106_v30, %v969_v11 }
 0x449   : > { %1001 = vst [vmem:[%s272_s29 + $0x18] sm:$0xff] %v975_v36 }
 0x44a   : > { %1000 = vst [vmem:[%s272_s29 + $0x10] sm:$0xff] %v970_v37  ;;  %v1301_v38 = vpop.f32.mrb[12].mxu1 }
 0x44b   : > { %v985_v39 = vadd.f32 %v1301_v38, %v1106_v30  ;;  %v979_v40 = vpop.f32.mrb[13].mxu1 }
 0x44c   : > { %v980_v10 = vadd.f32 %v1106_v30, %v979_v40 }
 0x44d   : > { %1003 = vst [vmem:[%s272_s29 + $0x28] sm:$0xff] %v985_v39 }
 0x44e   : > { %1002 = vst [vmem:[%s272_s29 + $0x20] sm:$0xff] %v980_v10  ;;  %v1304_v41 = vpop.f32.mrb[14].mxu1 }
 0x44f   : > { %v995_v42 = vadd.f32 %v1304_v41, %v1106_v30  ;;  %v989_v43 = vpop.f32.mrb[15].mxu1 }
 0x450   : > { %v990_v45 = vadd.f32 %v1106_v30, %v989_v43 }
 0x451   : > { %1005 = vst [vmem:[%s272_s29 + $0x38] sm:$0xff] %v995_v42 }
 0x452   : > { %1004 = vst [vmem:[%s272_s29 + $0x30] sm:$0xff] %v990_v45 }
 0x453   : > { %1476 = shalt.err (!%p1473_p3)
}
 0x454   : > { %s1477_s22 = scalar_lea.hbm %s1814_s17, 1024  ;;  %s1481_s9 = scalar_lea.hbm %s1868_s7, 2048 }
 0x455   : > { %p1478_p4 = scmp.ne.s32.totalorder %s1814_s17, %s1477_s22  ;;  %p1482_p9 = scmp.lt.u32.totalorder %s1814_s17, %s1868_s7 }
 0x456   : > { %p1483_p10 = scmp.lt.u32.totalorder %s1481_s9, %s1477_s22  ;;  %p1485_p12 = scmp.lt.u32.totalorder %s1477_s22, %s1814_s17 }
 0x457   : > { %p1479_p7 = pnand %p1478_p4, %p1609_p5 }
 0x458   : > { %p1484_p11 = por %p1483_p10, %p1482_p9 }
 0x459   : > { %p1480_p8 = pneg %p1479_p7 }
 0x45a   : > { %p1486_p13 = por %p1485_p12, %p1484_p11 }
 0x45c   : > { %p1487_p0 = pnand %p1486_p13, %p1480_p8 }
 0x45e   : > { %1490 = shalt.err (!%p1487_p0)
}
 0x45f   : > { %s1529_s15 = smov 128   ;;  %s1530_s16 = smov 8  }
 0x460   : > { %1353 = dma.vmem_to_hbm [thread:$0]  (%p1609_p5), %s1816_s14, 1024, %s1814_s17, %s1820_s28, %s1529_s15, %s1529_s15, %s1530_s16  }
 0x461 PF: > { %p1359_p1 = scmp.ge.s32.totalorder %s1525_s27, 2  ;;  %s1035_s18 = sand.u32 1, %s1513_s24  }
 0x462   : > { %s1036_s19 = scalar_lea.sflag [#allocation3], %s1035_s18 }
 0x463   : > { %p1356_p2 = pnand %p1359_p1, %p1613_p6 }
 0x465   : > { %1508 = dma.done.wait (!%p1356_p2), %s1036_s19, 1024  }
 0x466   : > { %1510 = vsyncadd (!%p1356_p2), %s1036_s19, 4294966272  ;;  %p17_p3 = scmp.ge.s32.totalorder %s1596_s30, 4   ;;  %s1871_s24 = smov %s1517_s25 }
 0x467   : > { %s1872_s25 = smov %s1521_s26  ;;  %s1873_s26 = smov %s1607_s10 }
 0x468   : > { %s1874_s27 = smov %s1596_s30  ;;  %19 = sbr.rel (!%p17_p3) target bundleno = 3 (0x3), region = 84 }
 0x46f   :  { %1041 = vsyncpa [#allocation3], 1 }
 0x470   :  { %1043 = vsyncpa [#allocation3 + $0x1], 1 }

</bundles_post_ra>
